<compile_context>
chip_gen: v6e
topology: v6e:2x2x1
jax: 0.10.0
libtpu: 0.0.40
codegen_flags: <defaults>
</compile_context>

<pallas_src>
import numpy as np
import jax
import jax.numpy as jnp
from jax.experimental import pallas as pl
from jax.experimental.pallas import tpu as pltpu


# ----------------------------------------------------------------------------
# Kernels
# ----------------------------------------------------------------------------
def _attend_fuse_kernel(sid_ref, x_ref, w_ref, b1_ref, w2_ref, b2_ref, o_ref):
    """Fused per-pixel path on a (tn, C) row tile.

    z = x @ [Wf_s | W1_s]   (one bf16 MXU matmul, f32 accumulation)
    amap = sigmoid(relu(z[:, C:] + b1) @ w2 + b2)      (VPU/EUP, f32)
    out  = [amap * z[:, :C] | amap]                    (single packed store)
    """
    del sid_ref                                           # only used in index maps
    C = o_ref.shape[1] - 1
    x = x_ref[...]                                        # (tn, C) bf16
    z = jnp.dot(x, w_ref[...], preferred_element_type=jnp.float32)   # (tn, C+Cr)

    pre = z[:, :C]                                        # x @ Wf_s  (pre-gate)
    h = jnp.maximum(z[:, C:] + b1_ref[...], 0.0)          # conv1 + relu (tn, Cr)
    a = jnp.sum(h * w2_ref[...], axis=-1, keepdims=True) + b2_ref[...]  # conv2
    # sigmoid via exp + approximate reciprocal -> both on the EUP slot.
    amap = pl.reciprocal(1.0 + jnp.exp(-a), approx=True)  # (tn, 1) f32

    o_ref[...] = jnp.concatenate([pre * amap, amap], axis=-1)


def _make_upsample_kernel(n):
    """n independent (H*W, h_s*w_s) @ (h_s*w_s, Cc) interpolation matmuls."""
    def kernel(*refs):
        m_refs, y_refs, o_refs = refs[:n], refs[n:2 * n], refs[2 * n:]
        for m, y, o in zip(m_refs, y_refs, o_refs):
            o[...] = jnp.dot(m[...], y[...], preferred_element_type=jnp.float32)
    return kernel


# ----------------------------------------------------------------------------
# Tiling helpers
# ----------------------------------------------------------------------------
def _vmem_capacity_bytes():
    try:
        cap = getattr(pltpu.get_tpu_info(), "vmem_capacity_bytes", None)
        if cap:
            return int(cap)
    except Exception:
        pass
    return 64 * 1024 * 1024          # v7x-safe fallback


def _pick_row_tile(row_counts, in_row_bytes, out_row_bytes, weight_bytes):
    """Row tile: multiple of 8, sized from a per-generation VMEM budget
    (2x double-buffered in + 2x out blocks + weights), targeting >= ~2 MiB of
    input per grid step and >= 4 grid steps (both v7x TCs double-buffer)."""
    cap_bytes = _vmem_capacity_bytes()
    budget = max(32 * 1024 * 1024, (3 * cap_bytes) // 4)   # ~48 MiB v7x, ~96 MiB v5e/v6e
    usable = max(budget - weight_bytes, 1 << 20)
    cap_rows = max(8, (usable // (2 * (in_row_bytes + out_row_bytes))) // 8 * 8)
    target = max(1024, (2 * 1024 * 1024) // max(in_row_bytes, 1))
    target = max(8, (target // 8) * 8)
    tn = min(cap_rows, target)
    n_big = max(row_counts)
    if n_big >= 32:                                       # aim for >= 4 grid steps
        tn = min(tn, max(8, (n_big // 4) // 8 * 8))
    tn = min(tn, max(8, (n_big + 7) // 8 * 8))            # no pointless padding
    return int(max(8, tn)), int(budget)


# ----------------------------------------------------------------------------
# Pallas wrappers
# ----------------------------------------------------------------------------
def attend_and_fuse_group(xs_list, w_stack, b1_stack, w2_stack, b2_stack):
    """Run the fused attend+fuse kernel for one or more scales in ONE call.

    xs_list:  list of (N_s, C) bf16 row arrays (one per scale in the group).
    w_stack:  (S, C, C+Cr) bf16, per-scale [Wf_s | W1_s].
    Returns a list of (N_s, C+1) f32 arrays = [amap * (x @ Wf_s) | amap].
    """
    C = xs_list[0].shape[1]
    Cr = w2_stack.shape[-1]
    row_counts = [int(x.shape[0]) for x in xs_list]
    weight_bytes = int(w_stack.size) * 2 + 4 * int(
        b1_stack.size + w2_stack.size + b2_stack.size)
    tn, vmem_budget = _pick_row_tile(row_counts,
                                     in_row_bytes=2 * C,
                                     out_row_bytes=4 * (C + 1),
                                     weight_bytes=weight_bytes)

    blocks = [pl.cdiv(n, tn) for n in row_counts]
    padded = [b * tn for b in blocks]
    num_blocks = sum(blocks)

    segs = [x if p == n else jnp.pad(x, ((0, p - n), (0, 0)))
            for x, n, p in zip(xs_list, row_counts, padded)]
    x_cat = segs[0] if len(segs) == 1 else jnp.concatenate(segs, axis=0)

    # Per-grid-block scale index -> SMEM (scalar prefetch) for weight selection.
    scale_ids = jnp.asarray(
        np.repeat(np.arange(len(xs_list), dtype=np.int32), blocks))

    out = pl.pallas_call(
        _attend_fuse_kernel,
        out_shape=jax.ShapeDtypeStruct((num_blocks * tn, C + 1), jnp.float32),
        grid_spec=pltpu.PrefetchScalarGridSpec(
            num_scalar_prefetch=1,
            grid=(num_blocks,),
            in_specs=[
                pl.BlockSpec((tn, C), lambda i, sid: (i, 0)),
                pl.BlockSpec((None, C, C + Cr), lambda i, sid: (sid[i], 0, 0)),
                pl.BlockSpec((None, 1, Cr), lambda i, sid: (sid[i], 0, 0)),
                pl.BlockSpec((None, 1, Cr), lambda i, sid: (sid[i], 0, 0)),
                pl.BlockSpec((None, 1, 1), lambda i, sid: (sid[i], 0, 0)),
            ],
            out_specs=pl.BlockSpec((tn, C + 1), lambda i, sid: (i, 0))),
        compiler_params=pltpu.CompilerParams(
            dimension_semantics=("parallel",),
            vmem_limit_bytes=vmem_budget),
    )(scale_ids, x_cat, w_stack, b1_stack, w2_stack, b2_stack)

    outs, off = [], 0
    for n, p in zip(row_counts, padded):
        outs.append(out[off:off + n])
        off += p
    return outs


def multi_upsample(ys, kron_mats):
    """Upsample every reduced scale in ONE pallas_call (grid over batch).

    ys[k]:        (B, h_k*w_k, Cc) f32 packed [contribution | amap] rows.
    kron_mats[k]: (H*W, h_k*w_k)  f32 bilinear interpolation matrix.
    Returns list of (B, H*W, Cc) f32.
    """
    n = len(ys)
    B = ys[0].shape[0]
    Cc = ys[0].shape[-1]
    HW = kron_mats[0].shape[0]

    in_specs = ([pl.BlockSpec(tuple(m.shape), lambda b: (0, 0)) for m in kron_mats]
                + [pl.BlockSpec((None, int(y.shape[1]), Cc), lambda b: (b, 0, 0))
                   for y in ys])
    out_specs = [pl.BlockSpec((None, HW, Cc), lambda b: (b, 0, 0)) for _ in range(n)]
    out_shape = tuple(jax.ShapeDtypeStruct((B, HW, Cc), jnp.float32)
                      for _ in range(n))

    outs = pl.pallas_call(
        _make_upsample_kernel(n),
        out_shape=out_shape,
        grid_spec=pltpu.PrefetchScalarGridSpec(
            num_scalar_prefetch=0,
            grid=(B,),
            in_specs=in_specs,
            out_specs=out_specs),
        compiler_params=pltpu.CompilerParams(
            dimension_semantics=("parallel",)),
    )(*kron_mats, *ys)
    if not isinstance(outs, (tuple, list)):
        outs = (outs,)
    return list(outs)


# ----------------------------------------------------------------------------
# Glue (interpolation weights, pooling, parameters, forward)
# ----------------------------------------------------------------------------
def _bilinear_matrix_1d(out_size, in_size):
    """PyTorch F.interpolate(mode='bilinear', align_corners=False) weights."""
    dst = np.arange(out_size, dtype=np.float64)
    src = (dst + 0.5) * (in_size / out_size) - 0.5
    src = np.maximum(src, 0.0)
    i0 = np.minimum(np.floor(src).astype(np.int64), in_size - 1)
    i1 = np.minimum(i0 + 1, in_size - 1)
    l1 = src - i0
    m = np.zeros((out_size, in_size), dtype=np.float64)
    np.add.at(m, (dst.astype(np.int64), i0), 1.0 - l1)
    np.add.at(m, (dst.astype(np.int64), i1), l1)
    return m


def make_params(key, C, scales, reduction=16):
    Cr = max(C // reduction, 1)
    n = len(scales)
    keys = jax.random.split(key, 4 * n + 2)
    attn = []
    for i in range(n):
        k1, k2, k3, k4 = keys[4 * i:4 * i + 4]
        w1 = jax.random.normal(k1, (C, Cr), jnp.float32) * 0.2
        b1 = jax.random.normal(k2, (Cr,), jnp.float32) * 0.1
        w2 = jax.random.normal(k3, (Cr, 1), jnp.float32) * 0.2
        b2 = jax.random.normal(k4, (1,), jnp.float32) * 0.1
        attn.append((w1, b1, w2, b2))
    wf = jax.random.normal(keys[-2], (C * n, C), jnp.float32) * 0.1
    bf = jax.random.normal(keys[-1], (C,), jnp.float32) * 0.1
    return {"attn": attn, "fusion": (wf, bf)}


def _forward(x_nchw, params, scales):
    B, C, H, W = x_nchw.shape
    scales = tuple(scales)
    S = len(scales)
    wf, bf = params["fusion"]
    Cr = params["attn"][0][0].shape[1]

    # NCHW -> NHWC, streamed as bf16 (gate math is upcast to f32 in-kernel).
    x_bf = jnp.transpose(x_nchw, (0, 2, 3, 1)).astype(jnp.bfloat16)

    # Per-scale fused weight [Wf_s | W1_s] (big lane slice is the aligned prefix).
    w_all = [jnp.concatenate([wf[i * C:(i + 1) * C, :], params["attn"][i][0]],
                             axis=1) for i in range(S)]
    b1_all = [params["attn"][i][1].reshape(1, Cr) for i in range(S)]
    w2_all = [params["attn"][i][2].reshape(1, Cr) for i in range(S)]
    b2_all = [params["attn"][i][3].reshape(1, 1) for i in range(S)]

    # Pooled inputs per scale; chained pooling avoids re-reading full-res x.
    xs_list, dims = [], []
    prev, prev_s = x_bf, 1
    for s in scales:
        if s == 1:
            xs, h, w = x_bf, H, W
        else:
            # TODO(synk): general adaptive_avg_pool2d for non-divisible sizes;
            # block-mean pooling matches PyTorch only when divisible.
            assert H % s == 0 and W % s == 0, "H, W must be divisible by scale"
            h, w = H // s, W // s
            if s % prev_s == 0 and s > prev_s:
                src, r = prev, s // prev_s
            else:
                src, r = x_bf, s
            sh, sw = src.shape[1] // r, src.shape[2] // r
            xs = src.reshape(B, sh, r, sw, r, C).mean(
                axis=(2, 4), dtype=jnp.float32).astype(jnp.bfloat16)
            prev, prev_s = xs, s
        xs_list.append(xs.reshape(B * h * w, C))
        dims.append((h, w))

    def stack(ws, idxs, dtype=None):
        t = jnp.stack([ws[i] for i in idxs], axis=0)
        return t.astype(dtype) if dtype is not None else t

    # Group 0: full-res scale alone (no copy of full-res x).
    # Group 1: all remaining (reduced) scales merged into one pallas_call.
    groups = [[0]] + ([list(range(1, S))] if S > 1 else [])
    outs = [None] * S
    for g in groups:
        res = attend_and_fuse_group(
            [xs_list[i] for i in g],
            stack(w_all, g, jnp.bfloat16),
            stack(b1_all, g), stack(w2_all, g), stack(b2_all, g))
        for i, o in zip(g, res):
            outs[i] = o

    # Bilinear upsample of the packed [contribution | amap] rows for s > 1.
    reduced = [i for i, s in enumerate(scales) if s != 1]
    if reduced:
        kron_mats, ys = [], []
        for i in reduced:
            h, w = dims[i]
            m = np.kron(_bilinear_matrix_1d(H, h), _bilinear_matrix_1d(W, w))
            kron_mats.append(jnp.asarray(m, jnp.float32))
            ys.append(outs[i].reshape(B, h * w, C + 1))
        for i, u in zip(reduced, multi_upsample(ys, kron_mats)):
            outs[i] = u

    fused = None
    attention_maps = []
    for i in range(S):
        y = outs[i].reshape(B, H, W, C + 1)
        contrib = y[..., :C]
        amap = y[..., C:]
        fused = contrib if fused is None else fused + contrib
        attention_maps.append(jnp.transpose(amap, (0, 3, 1, 2)))   # (B,1,H,W)

    fused = fused + bf.reshape(1, 1, 1, C)          # fusion bias added exactly once
    return jnp.transpose(fused, (0, 3, 1, 2)), attention_maps


multi_scale_attention = jax.jit(_forward, static_argnums=(2,))


# ----------------------------------------------------------------------------
# Pure-JAX reference (mirrors the PyTorch module) for a correctness check
# ----------------------------------------------------------------------------
def _reference_forward(x_nchw, params, scales):
    B, C, H, W = x_nchw.shape
    x = jnp.transpose(x_nchw, (0, 2, 3, 1)).astype(jnp.float32)
    wf, bf = params["fusion"]
    feats, maps = [], []
    for i, s in enumerate(scales):
        w1, b1, w2, b2 = params["attn"][i]
        if s == 1:
            h, w = H, W
            xs = x
        else:
            h, w = H // s, W // s
            xs = x.reshape(B, h, s, w, s, C).mean(axis=(2, 4))
        a = jnp.maximum(jnp.einsum("bhwc,cr->bhwr", xs, w1) + b1, 0.0)
        a = jnp.einsum("bhwr,ro->bhwo", a, w2) + b2
        amap = jax.nn.sigmoid(a)
        att = xs * amap
        if s != 1:
            mh = jnp.asarray(_bilinear_matrix_1d(H, h), jnp.float32)
            mw = jnp.asarray(_bilinear_matrix_1d(W, w), jnp.float32)
            att = jnp.einsum("Hh,Ww,bhwc->bHWc", mh, mw, att)
            amap = jnp.einsum("Hh,Ww,bhwc->bHWc", mh, mw, amap)
        feats.append(att)
        maps.append(jnp.transpose(amap, (0, 3, 1, 2)))
    cat = jnp.concatenate(feats, axis=-1)
    fused = jnp.einsum("bhwk,kc->bhwc", cat, wf) + bf
    return jnp.transpose(fused, (0, 3, 1, 2)), maps


# ----------------------------------------------------------------------------
if __name__ == "__main__":
    B, C, H, W = 2, 32, 16, 16            # reduction=16 -> hidden channels = 2
    scales = (1, 2, 4)

    key = jax.random.PRNGKey(0)
    kx, kp = jax.random.split(key)
    x = jax.random.normal(kx, (B, C, H, W), jnp.float32)
    params = make_params(kp, C, scales)

    fused, maps = multi_scale_attention(x, params, scales)
    jax.block_until_ready(fused)
    for m in maps:
        jax.block_until_ready(m)

    assert fused.shape == (B, C, H, W)
    assert all(m.shape == (B, 1, H, W) for m in maps)
    assert bool(jnp.all(jnp.isfinite(fused)))

    # Correctness vs a pure-JAX f32 reference (kernel path uses bf16 inputs
    # for the MXU matmuls, so tolerances are loose-ish but tight enough to
    # catch structural errors).
    ref_fused, ref_maps = _reference_forward(x, params, scales)
    np.testing.assert_allclose(np.asarray(fused), np.asarray(ref_fused),
                               rtol=5e-2, atol=5e-2)
    for m, rm in zip(maps, ref_maps):
        np.testing.assert_allclose(np.asarray(m), np.asarray(rm),
                                   rtol=2e-2, atol=2e-2)

    print("KERNEL_OK")
</pallas_src>

<mosaic_0001>
module attributes {stable_mosaic.version = 11 : i64} {
  func.func @_attend_fuse_kernel(%arg0: i32, %arg1: memref<5xi32, #tpu.memory_space<smem>>, %arg2: memref<32x32xbf16, #tpu.memory_space<vmem>>, %arg3: memref<1x32x34xbf16, #tpu.memory_space<vmem>>, %arg4: memref<1x1x2xf32, #tpu.memory_space<vmem>>, %arg5: memref<1x1x2xf32, #tpu.memory_space<vmem>>, %arg6: memref<1x1x1xf32, #tpu.memory_space<vmem>>, %arg7: memref<32x33xf32, #tpu.memory_space<vmem>>) attributes {dimension_semantics = [#tpu.dimension_semantics<parallel>], iteration_bounds = array<i64: 5>, scalar_prefetch = 1 : i64, scratch_operands = 0 : i64, tpu.core_type = #tpu.core_type<tc>, window_params = [{transform_indices = @transform_0, window_bounds = array<i64: 32, 32>}, {transform_indices = @transform_1, window_bounds = array<i64: 1, 32, 34>}, {transform_indices = @transform_2, window_bounds = array<i64: 1, 1, 2>}, {transform_indices = @transform_3, window_bounds = array<i64: 1, 1, 2>}, {transform_indices = @transform_4, window_bounds = array<i64: 1, 1, 1>}, {transform_indices = @transform_5, window_bounds = array<i64: 32, 33>}]} {
    %c0 = arith.constant 0 : index
    %c0_0 = arith.constant 0 : index
    %0 = vector.load %arg2[%c0, %c0_0] : memref<32x32xbf16, #tpu.memory_space<vmem>>, vector<32x32xbf16>
    %c0_1 = arith.constant 0 : index
    %c0_2 = arith.constant 0 : index
    %c0_3 = arith.constant 0 : index
    %1 = vector.load %arg3[%c0_1, %c0_2, %c0_3] : memref<1x32x34xbf16, #tpu.memory_space<vmem>>, vector<1x32x34xbf16>
    %2 = vector.shape_cast %1 : vector<1x32x34xbf16> to vector<32x34xbf16>
    %cst = arith.constant dense<0.000000e+00> : vector<32x34xf32>
    %3 = tpu.matmul %0, %2, %cst {dimension_numbers = #tpu.dot_dimension_numbers<[1], [0], [0], [1], [0, 0, 1, 1], [], []>} : vector<32x32xbf16>, vector<32x34xbf16>, vector<32x34xf32> -> vector<32x34xf32>
    %4 = vector.extract_strided_slice %3 {offsets = [0, 0], sizes = [32, 32], strides = [1, 1]} : vector<32x34xf32> to vector<32x32xf32>
    %5 = vector.extract_strided_slice %3 {offsets = [0, 32], sizes = [32, 2], strides = [1, 1]} : vector<32x34xf32> to vector<32x2xf32>
    %c0_4 = arith.constant 0 : index
    %c0_5 = arith.constant 0 : index
    %c0_6 = arith.constant 0 : index
    %6 = vector.load %arg4[%c0_4, %c0_5, %c0_6] : memref<1x1x2xf32, #tpu.memory_space<vmem>>, vector<1x1x2xf32>
    %7 = vector.shape_cast %6 : vector<1x1x2xf32> to vector<1x2xf32>
    %8 = vector.broadcast %7 : vector<1x2xf32> to vector<32x2xf32>
    %9 = arith.addf %5, %8 : vector<32x2xf32>
    %cst_7 = arith.constant 0.000000e+00 : f32
    %10 = vector.broadcast %cst_7 : f32 to vector<32x2xf32>
    %11 = arith.maximumf %9, %10 : vector<32x2xf32>
    %c0_8 = arith.constant 0 : index
    %c0_9 = arith.constant 0 : index
    %c0_10 = arith.constant 0 : index
    %12 = vector.load %arg5[%c0_8, %c0_9, %c0_10] : memref<1x1x2xf32, #tpu.memory_space<vmem>>, vector<1x1x2xf32>
    %13 = vector.shape_cast %12 : vector<1x1x2xf32> to vector<1x2xf32>
    %14 = vector.broadcast %13 : vector<1x2xf32> to vector<32x2xf32>
    %15 = arith.mulf %11, %14 : vector<32x2xf32>
    %cst_11 = arith.constant dense<0.000000e+00> : vector<32xf32>
    %16 = vector.multi_reduction <add>, %15, %cst_11 [1] : vector<32x2xf32> to vector<32xf32>
    %17 = vector.shape_cast %16 : vector<32xf32> to vector<32x1xf32>
    %c0_12 = arith.constant 0 : index
    %c0_13 = arith.constant 0 : index
    %c0_14 = arith.constant 0 : index
    %18 = vector.load %arg6[%c0_12, %c0_13, %c0_14] : memref<1x1x1xf32, #tpu.memory_space<vmem>>, vector<1x1x1xf32>
    %19 = vector.shape_cast %18 : vector<1x1x1xf32> to vector<1x1xf32>
    %20 = vector.broadcast %19 : vector<1x1xf32> to vector<32x1xf32>
    %21 = arith.addf %17, %20 : vector<32x1xf32>
    %cst_15 = arith.constant 0.000000e+00 : f32
    %22 = vector.broadcast %cst_15 : f32 to vector<32x1xf32>
    %23 = arith.subf %22, %21 : vector<32x1xf32>
    %24 = math.exp %23 : vector<32x1xf32>
    %cst_16 = arith.constant 1.000000e+00 : f32
    %25 = vector.broadcast %cst_16 : f32 to vector<32x1xf32>
    %26 = arith.addf %25, %24 : vector<32x1xf32>
    %27 = tpu.reciprocal %26 {approx = true} : vector<32x1xf32> -> vector<32x1xf32>
    %28 = vector.broadcast %27 : vector<32x1xf32> to vector<32x32xf32>
    %29 = arith.mulf %4, %28 : vector<32x32xf32>
    %30 = tpu.concatenate %29, %27 in 1 : vector<32x32xf32>, vector<32x1xf32> -> vector<32x33xf32>
    %c0_17 = arith.constant 0 : index
    %c0_18 = arith.constant 0 : index
    %31 = vector.load %arg7[%c0_17, %c0_18] : memref<32x33xf32, #tpu.memory_space<vmem>>, vector<32x33xf32>
    tpu.vector_store %arg7[%c0_17, %c0_18], %30 {strides = array<i32>} : memref<32x33xf32, #tpu.memory_space<vmem>>, vector<32x33xf32>,
    return
  }
  func.func @transform_0(%arg0: i32, %arg1: memref<5xi32, #tpu.memory_space<smem>>) -> (i32, i32) {
    %c0_i32 = arith.constant 0 : i32
    %c0_i32_0 = arith.constant 0 : i32
    return %arg0, %c0_i32 : i32, i32
  }
  func.func @transform_1(%arg0: i32, %arg1: memref<5xi32, #tpu.memory_space<smem>>) -> (i32, i32, i32) {
    %0 = arith.index_cast %arg0 : i32 to index
    %1 = memref.load %arg1[%0] : memref<5xi32, #tpu.memory_space<smem>>
    %c0_i32 = arith.constant 0 : i32
    %c0_i32_0 = arith.constant 0 : i32
    %c0_i32_1 = arith.constant 0 : i32
    return %1, %c0_i32, %c0_i32_0 : i32, i32, i32
  }
  func.func @transform_2(%arg0: i32, %arg1: memref<5xi32, #tpu.memory_space<smem>>) -> (i32, i32, i32) {
    %0 = arith.index_cast %arg0 : i32 to index
    %1 = memref.load %arg1[%0] : memref<5xi32, #tpu.memory_space<smem>>
    %c0_i32 = arith.constant 0 : i32
    %c0_i32_0 = arith.constant 0 : i32
    %c0_i32_1 = arith.constant 0 : i32
    return %1, %c0_i32, %c0_i32_0 : i32, i32, i32
  }
  func.func @transform_3(%arg0: i32, %arg1: memref<5xi32, #tpu.memory_space<smem>>) -> (i32, i32, i32) {
    %0 = arith.index_cast %arg0 : i32 to index
    %1 = memref.load %arg1[%0] : memref<5xi32, #tpu.memory_space<smem>>
    %c0_i32 = arith.constant 0 : i32
    %c0_i32_0 = arith.constant 0 : i32
    %c0_i32_1 = arith.constant 0 : i32
    return %1, %c0_i32, %c0_i32_0 : i32, i32, i32
  }
  func.func @transform_4(%arg0: i32, %arg1: memref<5xi32, #tpu.memory_space<smem>>) -> (i32, i32, i32) {
    %0 = arith.index_cast %arg0 : i32 to index
    %1 = memref.load %arg1[%0] : memref<5xi32, #tpu.memory_space<smem>>
    %c0_i32 = arith.constant 0 : i32
    %c0_i32_0 = arith.constant 0 : i32
    %c0_i32_1 = arith.constant 0 : i32
    return %1, %c0_i32, %c0_i32_0 : i32, i32, i32
  }
  func.func @transform_5(%arg0: i32, %arg1: memref<5xi32, #tpu.memory_space<smem>>) -> (i32, i32) {
    %c0_i32 = arith.constant 0 : i32
    %c0_i32_0 = arith.constant 0 : i32
    return %arg0, %c0_i32 : i32, i32
  }
}

module attributes {stable_mosaic.version = 11 : i64} {
  func.func @_attend_fuse_kernel(%arg0: i32, %arg1: memref<4xi32, #tpu.memory_space<smem>>, %arg2: memref<128x32xbf16, #tpu.memory_space<vmem>>, %arg3: memref<1x32x34xbf16, #tpu.memory_space<vmem>>, %arg4: memref<1x1x2xf32, #tpu.memory_space<vmem>>, %arg5: memref<1x1x2xf32, #tpu.memory_space<vmem>>, %arg6: memref<1x1x1xf32, #tpu.memory_space<vmem>>, %arg7: memref<128x33xf32, #tpu.memory_space<vmem>>) attributes {dimension_semantics = [#tpu.dimension_semantics<parallel>], iteration_bounds = array<i64: 4>, scalar_prefetch = 1 : i64, scratch_operands = 0 : i64, tpu.core_type = #tpu.core_type<tc>, window_params = [{transform_indices = @transform_0, window_bounds = array<i64: 128, 32>}, {transform_indices = @transform_1, window_bounds = array<i64: 1, 32, 34>}, {transform_indices = @transform_2, window_bounds = array<i64: 1, 1, 2>}, {transform_indices = @transform_3, window_bounds = array<i64: 1, 1, 2>}, {transform_indices = @transform_4, window_bounds = array<i64: 1, 1, 1>}, {transform_indices = @transform_5, window_bounds = array<i64: 128, 33>}]} {
    %c0 = arith.constant 0 : index
    %c0_0 = arith.constant 0 : index
    %0 = vector.load %arg2[%c0, %c0_0] : memref<128x32xbf16, #tpu.memory_space<vmem>>, vector<128x32xbf16>
    %c0_1 = arith.constant 0 : index
    %c0_2 = arith.constant 0 : index
    %c0_3 = arith.constant 0 : index
    %1 = vector.load %arg3[%c0_1, %c0_2, %c0_3] : memref<1x32x34xbf16, #tpu.memory_space<vmem>>, vector<1x32x34xbf16>
    %2 = vector.shape_cast %1 : vector<1x32x34xbf16> to vector<32x34xbf16>
    %cst = arith.constant dense<0.000000e+00> : vector<128x34xf32>
    %3 = tpu.matmul %0, %2, %cst {dimension_numbers = #tpu.dot_dimension_numbers<[1], [0], [0], [1], [0, 0, 1, 1], [], []>} : vector<128x32xbf16>, vector<32x34xbf16>, vector<128x34xf32> -> vector<128x34xf32>
    %4 = vector.extract_strided_slice %3 {offsets = [0, 0], sizes = [128, 32], strides = [1, 1]} : vector<128x34xf32> to vector<128x32xf32>
    %5 = vector.extract_strided_slice %3 {offsets = [0, 32], sizes = [128, 2], strides = [1, 1]} : vector<128x34xf32> to vector<128x2xf32>
    %c0_4 = arith.constant 0 : index
    %c0_5 = arith.constant 0 : index
    %c0_6 = arith.constant 0 : index
    %6 = vector.load %arg4[%c0_4, %c0_5, %c0_6] : memref<1x1x2xf32, #tpu.memory_space<vmem>>, vector<1x1x2xf32>
    %7 = vector.shape_cast %6 : vector<1x1x2xf32> to vector<1x2xf32>
    %8 = vector.broadcast %7 : vector<1x2xf32> to vector<128x2xf32>
    %9 = arith.addf %5, %8 : vector<128x2xf32>
    %cst_7 = arith.constant 0.000000e+00 : f32
    %10 = vector.broadcast %cst_7 : f32 to vector<128x2xf32>
    %11 = arith.maximumf %9, %10 : vector<128x2xf32>
    %c0_8 = arith.constant 0 : index
    %c0_9 = arith.constant 0 : index
    %c0_10 = arith.constant 0 : index
    %12 = vector.load %arg5[%c0_8, %c0_9, %c0_10] : memref<1x1x2xf32, #tpu.memory_space<vmem>>, vector<1x1x2xf32>
    %13 = vector.shape_cast %12 : vector<1x1x2xf32> to vector<1x2xf32>
    %14 = vector.broadcast %13 : vector<1x2xf32> to vector<128x2xf32>
    %15 = arith.mulf %11, %14 : vector<128x2xf32>
    %cst_11 = arith.constant dense<0.000000e+00> : vector<128xf32>
    %16 = vector.multi_reduction <add>, %15, %cst_11 [1] : vector<128x2xf32> to vector<128xf32>
    %17 = vector.shape_cast %16 : vector<128xf32> to vector<128x1xf32>
    %c0_12 = arith.constant 0 : index
    %c0_13 = arith.constant 0 : index
    %c0_14 = arith.constant 0 : index
    %18 = vector.load %arg6[%c0_12, %c0_13, %c0_14] : memref<1x1x1xf32, #tpu.memory_space<vmem>>, vector<1x1x1xf32>
    %19 = vector.shape_cast %18 : vector<1x1x1xf32> to vector<1x1xf32>
    %20 = vector.broadcast %19 : vector<1x1xf32> to vector<128x1xf32>
    %21 = arith.addf %17, %20 : vector<128x1xf32>
    %cst_15 = arith.constant 0.000000e+00 : f32
    %22 = vector.broadcast %cst_15 : f32 to vector<128x1xf32>
    %23 = arith.subf %22, %21 : vector<128x1xf32>
    %24 = math.exp %23 : vector<128x1xf32>
    %cst_16 = arith.constant 1.000000e+00 : f32
    %25 = vector.broadcast %cst_16 : f32 to vector<128x1xf32>
    %26 = arith.addf %25, %24 : vector<128x1xf32>
    %27 = tpu.reciprocal %26 {approx = true} : vector<128x1xf32> -> vector<128x1xf32>
    %28 = vector.broadcast %27 : vector<128x1xf32> to vector<128x32xf32>
    %29 = arith.mulf %4, %28 : vector<128x32xf32>
    %30 = tpu.concatenate %29, %27 in 1 : vector<128x32xf32>, vector<128x1xf32> -> vector<128x33xf32>
    %c0_17 = arith.constant 0 : index
    %c0_18 = arith.constant 0 : index
    %31 = vector.load %arg7[%c0_17, %c0_18] : memref<128x33xf32, #tpu.memory_space<vmem>>, vector<128x33xf32>
    tpu.vector_store %arg7[%c0_17, %c0_18], %30 {strides = array<i32>} : memref<128x33xf32, #tpu.memory_space<vmem>>, vector<128x33xf32>,
    return
  }
  func.func @transform_0(%arg0: i32, %arg1: memref<4xi32, #tpu.memory_space<smem>>) -> (i32, i32) {
    %c0_i32 = arith.constant 0 : i32
    %c0_i32_0 = arith.constant 0 : i32
    return %arg0, %c0_i32 : i32, i32
  }
  func.func @transform_1(%arg0: i32, %arg1: memref<4xi32, #tpu.memory_space<smem>>) -> (i32, i32, i32) {
    %0 = arith.index_cast %arg0 : i32 to index
    %1 = memref.load %arg1[%0] : memref<4xi32, #tpu.memory_space<smem>>
    %c0_i32 = arith.constant 0 : i32
    %c0_i32_0 = arith.constant 0 : i32
    %c0_i32_1 = arith.constant 0 : i32
    return %1, %c0_i32, %c0_i32_0 : i32, i32, i32
  }
  func.func @transform_2(%arg0: i32, %arg1: memref<4xi32, #tpu.memory_space<smem>>) -> (i32, i32, i32) {
    %0 = arith.index_cast %arg0 : i32 to index
    %1 = memref.load %arg1[%0] : memref<4xi32, #tpu.memory_space<smem>>
    %c0_i32 = arith.constant 0 : i32
    %c0_i32_0 = arith.constant 0 : i32
    %c0_i32_1 = arith.constant 0 : i32
    return %1, %c0_i32, %c0_i32_0 : i32, i32, i32
  }
  func.func @transform_3(%arg0: i32, %arg1: memref<4xi32, #tpu.memory_space<smem>>) -> (i32, i32, i32) {
    %0 = arith.index_cast %arg0 : i32 to index
    %1 = memref.load %arg1[%0] : memref<4xi32, #tpu.memory_space<smem>>
    %c0_i32 = arith.constant 0 : i32
    %c0_i32_0 = arith.constant 0 : i32
    %c0_i32_1 = arith.constant 0 : i32
    return %1, %c0_i32, %c0_i32_0 : i32, i32, i32
  }
  func.func @transform_4(%arg0: i32, %arg1: memref<4xi32, #tpu.memory_space<smem>>) -> (i32, i32, i32) {
    %0 = arith.index_cast %arg0 : i32 to index
    %1 = memref.load %arg1[%0] : memref<4xi32, #tpu.memory_space<smem>>
    %c0_i32 = arith.constant 0 : i32
    %c0_i32_0 = arith.constant 0 : i32
    %c0_i32_1 = arith.constant 0 : i32
    return %1, %c0_i32, %c0_i32_0 : i32, i32, i32
  }
  func.func @transform_5(%arg0: i32, %arg1: memref<4xi32, #tpu.memory_space<smem>>) -> (i32, i32) {
    %c0_i32 = arith.constant 0 : i32
    %c0_i32_0 = arith.constant 0 : i32
    return %arg0, %c0_i32 : i32, i32
  }
}

module attributes {stable_mosaic.version = 11 : i64} {
  func.func @kernel(%arg0: i32, %arg1: memref<256x64xf32, #tpu.memory_space<vmem>>, %arg2: memref<256x16xf32, #tpu.memory_space<vmem>>, %arg3: memref<1x64x33xf32, #tpu.memory_space<vmem>>, %arg4: memref<1x16x33xf32, #tpu.memory_space<vmem>>, %arg5: memref<1x256x33xf32, #tpu.memory_space<vmem>>, %arg6: memref<1x256x33xf32, #tpu.memory_space<vmem>>) attributes {dimension_semantics = [#tpu.dimension_semantics<parallel>], iteration_bounds = array<i64: 2>, scalar_prefetch = 0 : i64, scratch_operands = 0 : i64, tpu.core_type = #tpu.core_type<tc>, window_params = [{pipeline_mode = #tpu.pipeline_mode<synchronous>, transform_indices = @transform_0, window_bounds = array<i64: 256, 64>}, {pipeline_mode = #tpu.pipeline_mode<synchronous>, transform_indices = @transform_1, window_bounds = array<i64: 256, 16>}, {transform_indices = @transform_2, window_bounds = array<i64: 1, 64, 33>}, {transform_indices = @transform_3, window_bounds = array<i64: 1, 16, 33>}, {transform_indices = @transform_4, window_bounds = array<i64: 1, 256, 33>}, {transform_indices = @transform_5, window_bounds = array<i64: 1, 256, 33>}]} {
    %c0 = arith.constant 0 : index
    %c0_0 = arith.constant 0 : index
    %0 = vector.load %arg1[%c0, %c0_0] : memref<256x64xf32, #tpu.memory_space<vmem>>, vector<256x64xf32>
    %c0_1 = arith.constant 0 : index
    %c0_2 = arith.constant 0 : index
    %c0_3 = arith.constant 0 : index
    %1 = vector.load %arg3[%c0_1, %c0_2, %c0_3] : memref<1x64x33xf32, #tpu.memory_space<vmem>>, vector<1x64x33xf32>
    %2 = vector.shape_cast %1 : vector<1x64x33xf32> to vector<64x33xf32>
    %cst = arith.constant dense<0.000000e+00> : vector<256x33xf32>
    %3 = tpu.matmul %0, %2, %cst {dimension_numbers = #tpu.dot_dimension_numbers<[1], [0], [0], [1], [0, 0, 1, 1], [], []>} : vector<256x64xf32>, vector<64x33xf32>, vector<256x33xf32> -> vector<256x33xf32>
    %c0_4 = arith.constant 0 : index
    %c0_5 = arith.constant 0 : index
    %c0_6 = arith.constant 0 : index
    %4 = vector.load %arg5[%c0_4, %c0_5, %c0_6] : memref<1x256x33xf32, #tpu.memory_space<vmem>>, vector<1x256x33xf32>
    %5 = vector.shape_cast %4 : vector<1x256x33xf32> to vector<256x33xf32>
    %6 = vector.shape_cast %3 : vector<256x33xf32> to vector<1x256x33xf32>
    tpu.vector_store %arg5[%c0_4, %c0_5, %c0_6], %6 {strides = array<i32>} : memref<1x256x33xf32, #tpu.memory_space<vmem>>, vector<1x256x33xf32>,
    %c0_7 = arith.constant 0 : index
    %c0_8 = arith.constant 0 : index
    %7 = vector.load %arg2[%c0_7, %c0_8] : memref<256x16xf32, #tpu.memory_space<vmem>>, vector<256x16xf32>
    %c0_9 = arith.constant 0 : index
    %c0_10 = arith.constant 0 : index
    %c0_11 = arith.constant 0 : index
    %8 = vector.load %arg4[%c0_9, %c0_10, %c0_11] : memref<1x16x33xf32, #tpu.memory_space<vmem>>, vector<1x16x33xf32>
    %9 = vector.shape_cast %8 : vector<1x16x33xf32> to vector<16x33xf32>
    %cst_12 = arith.constant dense<0.000000e+00> : vector<256x33xf32>
    %10 = tpu.matmul %7, %9, %cst_12 {dimension_numbers = #tpu.dot_dimension_numbers<[1], [0], [0], [1], [0, 0, 1, 1], [], []>} : vector<256x16xf32>, vector<16x33xf32>, vector<256x33xf32> -> vector<256x33xf32>
    %c0_13 = arith.constant 0 : index
    %c0_14 = arith.constant 0 : index
    %c0_15 = arith.constant 0 : index
    %11 = vector.load %arg6[%c0_13, %c0_14, %c0_15] : memref<1x256x33xf32, #tpu.memory_space<vmem>>, vector<1x256x33xf32>
    %12 = vector.shape_cast %11 : vector<1x256x33xf32> to vector<256x33xf32>
    %13 = vector.shape_cast %10 : vector<256x33xf32> to vector<1x256x33xf32>
    tpu.vector_store %arg6[%c0_13, %c0_14, %c0_15], %13 {strides = array<i32>} : memref<1x256x33xf32, #tpu.memory_space<vmem>>, vector<1x256x33xf32>,
    return
  }
  func.func @transform_0(%arg0: i32) -> (i32, i32) {
    %c0_i32 = arith.constant 0 : i32
    %c0_i32_0 = arith.constant 0 : i32
    %c0_i32_1 = arith.constant 0 : i32
    return %c0_i32, %c0_i32_0 : i32, i32
  }
  func.func @transform_1(%arg0: i32) -> (i32, i32) {
    %c0_i32 = arith.constant 0 : i32
    %c0_i32_0 = arith.constant 0 : i32
    %c0_i32_1 = arith.constant 0 : i32
    return %c0_i32, %c0_i32_0 : i32, i32
  }
  func.func @transform_2(%arg0: i32) -> (i32, i32, i32) {
    %c0_i32 = arith.constant 0 : i32
    %c0_i32_0 = arith.constant 0 : i32
    %c0_i32_1 = arith.constant 0 : i32
    return %arg0, %c0_i32, %c0_i32_0 : i32, i32, i32
  }
  func.func @transform_3(%arg0: i32) -> (i32, i32, i32) {
    %c0_i32 = arith.constant 0 : i32
    %c0_i32_0 = arith.constant 0 : i32
    %c0_i32_1 = arith.constant 0 : i32
    return %arg0, %c0_i32, %c0_i32_0 : i32, i32, i32
  }
  func.func @transform_4(%arg0: i32) -> (i32, i32, i32) {
    %c0_i32 = arith.constant 0 : i32
    %c0_i32_0 = arith.constant 0 : i32
    %c0_i32_1 = arith.constant 0 : i32
    return %arg0, %c0_i32, %c0_i32_0 : i32, i32, i32
  }
  func.func @transform_5(%arg0: i32) -> (i32, i32, i32) {
    %c0_i32 = arith.constant 0 : i32
    %c0_i32_0 = arith.constant 0 : i32
    %c0_i32_1 = arith.constant 0 : i32
    return %arg0, %c0_i32, %c0_i32_0 : i32, i32, i32
  }
}

</mosaic_0001>

<bundles_post_ra>
// kernel: _forward.4
= control target key start
LH: loop header
LB: loop body
LE: loop exit
PB: predicated region body
PF: predicated region fallthrough
CT: control target
= control target key end

     0   :  { %s847_s0 = inlined_call_operand.vmem [shape: s32[5], index: 0, kind: input, shape index: {}]   ;;  %s848_s1 = inlined_call_operand.vmem [shape: bf16[160,32], index: 1, kind: input, shape index: {}]   ;;  %s849_s2 = inlined_call_operand.vmem [shape: bf16[2,32,34], index: 2, kind: input, shape index: {}]   ;;  %s850_s3 = inlined_call_operand.vmem [shape: f32[2,1,2], index: 3, kind: input, shape index: {}]   ;;  %s851_s4 = inlined_call_operand.vmem [shape: f32[2,1,2], index: 4, kind: input, shape index: {}]   ;;  %s852_s5 = inlined_call_operand.vmem [shape: f32[2,1,1], index: 5, kind: input, shape index: {}]   ;;  %s853_s6 = inlined_call_operand.vmem [shape: f32[160,33], index: 6, kind: output, shape index: {}]  }
   0x1   :  { %s11_s23 = sshll.u32 %s847_s0, 4  ;;  %s12_s23 = int_to_ptr.vmem [resolvable:$true] %s11_s23 }
   0x2   :  { %s711_s24 = scalar_lea.vmem %s12_s23, 16  ;;  %p716_p1 = scmp.lt.s32.totalorder %s12_s23, %s12_s23 }
   0x3   :  { %p712_p0 = scmp.ne.s32.totalorder %s12_s23, %s711_s24  ;;  %p717_p2 = scmp.lt.s32.totalorder %s711_s24, %s711_s24 }
   0x5   :  { %p718_p3 = por %p717_p2, %p716_p1 }
   0x7   :  { %p719_p4 = pnand %p718_p3, %p712_p0 }
   0x9   :  { %722 = shalt.err (!%p719_p4)  }
   0xa   :  { %s733_s25 = smov [#allocation3]  }
   0xb   :  { %14 = dma.vmem_to_smem %s12_s23, 16, %s733_s25, [#allocation2] }
   0xc   :  { %727 = dma.done.wait [#allocation2], 16 }
   0xd   :  { %728 = vsyncadd [#allocation2], 4294967280 }
   0xe   :  { %16 = sfence }
   0xf   :  { %s775_s26 = smov 0  }
  0x10 LB: > { %s781_s0 = sadd.s32 4294967295, %s731_s26   ;;  %p646_p5 = scmp.ge.s32.totalorder %s731_s26, 1  ;;  %s731_s26 = sphi %s775_s26, %s22_s26  }
  0x11   : > { %p245_p6 = scmp.lt.s32.totalorder %s731_s26, 6 }
  0x13   : > { %p246_p7 = pnand %p646_p5, %p245_p6 }
  0x14   : > { %s297_s27 = sld [smem:[#allocation3 + %s781_s0]] (!%p246_p7)  ;;  %s647_s28 = sshll.u32 (!%p246_p7), %s781_s0, 2 }
  0x15   : > { %249 = sbr.rel (%p246_p7) target bundleno = 682 (0x2aa), region = 40  ;;  %p292_p8 = scmp.lt.s32.totalorder (!%p246_p7), %s647_s28, 19 }
  0x16   : > { %s304_s29 = sld [smem:[#allocation3 + %s781_s0]] (!%p246_p7)  ;;  %s734_s21 = smov (!%p246_p7), 32  }
  0x17   : > { %s309_s30 = sld [smem:[#allocation3 + %s781_s0]] (!%p246_p7)  ;;  %s735_s22 = smov (!%p246_p7), 96  }
  0x18   : > { %s314_s23 = sld [smem:[#allocation3 + %s781_s0]] (!%p246_p7) }
  0x1a   : > { %s855_s28 = smov (!%p292_p8, %s647_s28), 19  ;;  %p298_p9 = scmp.lt.s32.totalorder %s297_s27, 1  ;;  %vm356_vm0 = vcmask 261120   ;;  %vm458_vm1 = vcmask 15360   ;;  %v736_v32 = vmov 0   ;;  %vm542_vm2 = vcmask 269312  }
  0x1b   : > { %s648_s7 = sshll.u32 %s855_s28, 2  ;;  %689 = vset.pattern.permute.xlu1 %v736_v32  ;;  %690 = vset.pattern.permute.xlu0 %v736_v32  ;;  %s652_s0 = sshll.u32 %s855_s28, 3 }
  0x1c   : > { %s295_s10 = scalar_lea.vmem %s848_s1, %s648_s7  ;;  %p305_p10 = scmp.lt.s32.totalorder %s304_s29, 1 }
  0x1d   : > { %v693_v0 = vld [vmem:[%s295_s10] sm:$0xff]   ;;  %s857_s27 = smov (!%p298_p9, %s297_s27), 1  ;;  %p310_p11 = scmp.lt.s32.totalorder %s309_s30, 1  ;;  %v694_v5 = vld [vmem:[%s295_s10 + $0x8] sm:$0xff]  }
  0x1e   : > { %673 = vmatprep.mubr.msk.bf16.mxu0 %vm356_vm0, %v693_v0  ;;  %s859_s29 = smov (!%p305_p10, %s304_s29), 1  ;;  %s664_s11 = sshll.u32 %s857_s27, 4 }
  0x1f   : > { %s302_s14 = scalar_lea.vmem %s849_s2, %s664_s11  ;;  %s307_s17 = scalar_lea.vmem %s850_s3, %s859_s29 }
  0x20   : > { %v691_v1 = vld [vmem:[%s302_s14 + $0x8] sm:$0xff]   ;;  %s861_s30 = smov (!%p310_p11, %s309_s30), 1  ;;  %v692_v2 = vld [vmem:[%s302_s14] sm:$0xff]   ;;  %p315_p12 = scmp.lt.s32.totalorder %s314_s23, 1 }
  0x21   : > { %669 = vmatprep.subr.bf16.mxu0 %v691_v1  ;;  %v659_v3 = vld [vmem:[%s307_s17] ss:$0 sm:$0xff]  ;;  %s312_s20 = scalar_lea.vmem %s851_s4, %s861_s30  ;;  %s323_s7 = scalar_lea.vmem %s853_s6, %s652_s0 }
  0x22   : > { %670 = vmatpush3.bf16.msra.mxu0 %v691_v1  ;;  %418 = vrot.lane.b32.xlu0 %v659_v3, %s734_s21  ;;  %v660_v4 = vld [vmem:[%s312_s20] ss:$0 sm:$0xff]  ;;  %s863_s23 = smov (!%p315_p12, %s314_s23), 1 }
  0x23   : > { %671 = vmatprep.subr.bf16.mxu0 %v692_v2  ;;  %s317_s27 = scalar_lea.vmem %s852_s5, %s863_s23 }
  0x24   : > { %v661_v33 = vld [vmem:[%s317_s27] ss:$0 sm:$0xff] }
  0x26   : > { %672 = vmatpush3.bf16.msra.mxu0 %v692_v2  ;;  %435 = vrot.lane.b32.xlu0 %v660_v4, %s734_s21 }
  0x29   : > { %674 = vmatmul.mubr.msk.bf16.vlgmr.msra.gmra.mxu0 %vm356_vm0, %v694_v5 }
  0x94   : > { %v419_v6 = vpop.permute.xlu0 %418 }
  0x98   : > { %v436_v10 = vpop.permute.xlu0 %435 }
  0xe9   : > { %v808_v7 = vpop.f32.mrf.mxu0 }
  0xea   : > { %v423_v8 = vadd.f32 %v808_v7, %v419_v6 }
  0xeb   : > { %v811_v9 = vpop.f32.mrf.mxu0 }
  0xec   : > { %v427_v11 = vmax.f32 %v423_v8, 0.0  ;;  %v421_v12 = vadd.f32 %v419_v6, %v811_v9 }
  0xed   : > { %v814_v13 = vpop.f32.mrf.mxu0 }
  0xee   : > { %v425_v14 = vmax.f32 %v421_v12, 0.0  ;;  %v440_v15 = vmul.f32 %v436_v10, %v427_v11  ;;  %v424_v17 = vadd.f32 %v814_v13, %v419_v6 }
  0xef   : > { %v816_v16 = vpop.f32.mrf.mxu0 }
  0xf0   : > { %v422_v18 = vadd.f32 %v419_v6, %v816_v16  ;;  %450 = vrot.lane.b32.xlu0 %v440_v15, %s735_s22  ;;  %v438_v19 = vmul.f32 %v436_v10, %v425_v14  ;;  %v428_v21 = vmax.f32 %v424_v17, 0.0 }
  0xf2   : > { %v426_v20 = vmax.f32 %v422_v18, 0.0  ;;  %446 = vrot.lane.b32.xlu1 %v438_v19, %s735_s22  ;;  %v441_v23 = vmul.f32 %v436_v10, %v428_v21 }
  0xf4   : > { %v439_v22 = vmul.f32 %v436_v10, %v426_v20 }
  0xf6   : > { %448 = vrot.lane.b32.xlu1 %v439_v22, %s735_s22 }
  0xfa   : > { %452 = vrot.lane.b32.xlu1 %v441_v23, %s735_s22 }
 0x162   : > { %v451_v26 = vpop.permute.xlu0 %450 }
 0x163   : > { %v465_v28 = vsel %vm458_vm1, %v451_v26, 0.0 }
 0x164   : > { %v447_v24 = vpop.permute.xlu1 %446 }
 0x165   : > { %v459_v25 = vsel %vm458_vm1, %v447_v24, 0.0 }
 0x166   : > { %460 = vadd.xlane.f32.xlu0 %v459_v25 }
 0x168   : > { %v449_v27 = vpop.permute.xlu1 %448 }
 0x169   : > { %v462_v29 = vsel %vm458_vm1, %v449_v27, 0.0 }
 0x16a   : > { %466 = vadd.xlane.f32.xlu0 %v465_v28  ;;  %463 = vadd.xlane.f32.xlu1 %v462_v29 }
 0x16c   : > { %v453_v30 = vpop.permute.xlu1 %452 }
 0x16d   : > { %v468_v31 = vsel %vm458_vm1, %v453_v30, 0.0 }
 0x16e   : > { %469 = vadd.xlane.f32.xlu0 %v468_v31 }
 0x1ef   : > { %v461_v34 = vpop.xlane.xlu0 %460 }
 0x1f0   : > { %v478_v35 = vadd.f32 %v661_v33, %v461_v34 }
 0x1f2   : > { %v482_v36 = vsub.f32 0.0, %v478_v35 }
 0x1f3   : > { %v467_v37 = vpop.xlane.xlu0 %466  ;;  %v464_v38 = vpop.xlane.xlu1 %463 }
 0x1f4   : > { %v486_v39 = vmul.f32 1.442695, %v482_v36  ;;  %v480_v40 = vadd.f32 %v661_v33, %v467_v37  ;;  %v479_v41 = vadd.f32 %v661_v33, %v464_v38 }
 0x1f6   : > { %695 = vpow2.f32 %v486_v39  ;;  %v484_v42 = vsub.f32 0.0, %v480_v40  ;;  %v483_v43 = vsub.f32 0.0, %v479_v41 }
 0x1f7   : > { %v470_v44 = vpop.xlane.xlu0 %469 }
 0x1f8   : > { %v490_v45 = vmul.f32 1.442695, %v484_v42  ;;  %v488_v46 = vmul.f32 1.442695, %v483_v43  ;;  %v481_v47 = vadd.f32 %v661_v33, %v470_v44 }
 0x1fa   : > { %697 = vpow2.f32 %v490_v45  ;;  %v485_v48 = vsub.f32 0.0, %v481_v47 }
 0x1fb   : > { %699 = vpow2.f32 %v488_v46 }
 0x1fc   : > { %v492_v49 = vmul.f32 1.442695, %v485_v48 }
 0x1fe   : > { %701 = vpow2.f32 %v492_v49 }
 0x203   : > { %v696_v50 = vpop.eup %695 }
 0x204   : > { %v494_v51 = vadd.f32 1.0, %v696_v50 }
 0x206   : > { %703 = vrcp.f32 %v494_v51 }
 0x207   : > { %v698_v52 = vpop.eup %697 }
 0x208   : > { %v700_v53 = vpop.eup %699  ;;  %v496_v54 = vadd.f32 1.0, %v698_v52 }
 0x209   : > { %v495_v55 = vadd.f32 1.0, %v700_v53 }
 0x20a   : > { %705 = vrcp.f32 %v496_v54 }
 0x20b   : > { %v702_v56 = vpop.eup %701  ;;  %707 = vrcp.f32 %v495_v55 }
 0x20c   : > { %v497_v57 = vadd.f32 1.0, %v702_v56 }
 0x20e   : > { %709 = vrcp.f32 %v497_v57 }
 0x213   : > { %v704_v58 = vpop.eup %703 }
 0x214   : > { %504 = vperm.xlu1 %689, %v704_v58  }
 0x217   : > { %v706_v59 = vpop.eup %705 }
 0x218   : > { %v708_v60 = vpop.eup %707  ;;  %514 = vperm.xlu1 %689, %v706_v59  }
 0x219   : > { %509 = vperm.xlu0 %690, %v708_v60  }
 0x21b   : > { %v710_v61 = vpop.eup %709 }
 0x21c   : > { %519 = vperm.xlu1 %689, %v710_v61  }
 0x220   : > { %526 = vrot.lane.b32.xlu1 %v704_v58, %s734_s21 }
 0x224   : > { %530 = vrot.lane.b32.xlu1 %v706_v59, %s734_s21 }
 0x228   : > { %528 = vrot.lane.b32.xlu1 %v708_v60, %s734_s21 }
 0x22c   : > { %532 = vrot.lane.b32.xlu1 %v710_v61, %s734_s21 }
 0x28f   : > { %v505_v62 = vpop.permute.xlu1 %504 }
 0x290   : > { %v522_v1 = vmul.f32 %v505_v62, %v811_v9 }
 0x293   : > { %v515_v63 = vpop.permute.xlu1 %514 }
 0x294   : > { %v524_v4 = vmul.f32 %v808_v7, %v515_v63  ;;  %v510_v5 = vpop.permute.xlu0 %509 }
 0x295   : > { %v523_v9 = vmul.f32 %v510_v5, %v816_v16 }
 0x297   : > { %v520_v0 = vpop.permute.xlu1 %519 }
 0x298   : > { %v525_v12 = vmul.f32 %v814_v13, %v520_v0 }
 0x29b   : > { %v527_v2 = vpop.permute.xlu1 %526 }
 0x29c   : > { %v538_v3 = vsel %vm356_vm0, %v522_v1, %v527_v2 }
 0x29d   : > { %543 = vst.msk [vmem:[%s323_s7] sm:$0xff] %vm542_vm2, %v538_v3 }
 0x29f   : > { %v531_v6 = vpop.permute.xlu1 %530 }
 0x2a0   : > { %v540_v8 = vsel %vm356_vm0, %v524_v4, %v531_v6 }
 0x2a1   : > { %545 = vst.msk [vmem:[%s323_s7 + $0x10] sm:$0xff] %vm542_vm2, %v540_v8 }
 0x2a3   : > { %v529_v10 = vpop.permute.xlu1 %528 }
 0x2a4   : > { %v539_v11 = vsel %vm356_vm0, %v523_v9, %v529_v10 }
 0x2a5   : > { %544 = vst.msk [vmem:[%s323_s7 + $0x8] sm:$0xff] %vm542_vm2, %v539_v11 }
 0x2a7   : > { %v533_v14 = vpop.permute.xlu1 %532 }
 0x2a8   : > { %v541_v15 = vsel %vm356_vm0, %v525_v12, %v533_v14 }
 0x2a9   : > { %546 = vst.msk [vmem:[%s323_s7 + $0x18] sm:$0xff] %vm542_vm2, %v541_v15 }
 0x2aa PF: > { %s22_s26 = sadd.s32 1, %s731_s26  }
 0x2ab   : > { %p19_p13 = scmp.ge.s32.totalorder %s22_s26, 7  }
 0x2ad   :  { %21 = sbr.rel (!%p19_p13) target bundleno = 16 (0x10), region = 82 }

// kernel: _forward.3
= control target key start
LH: loop header
LB: loop body
LE: loop exit
PB: predicated region body
PF: predicated region fallthrough
CT: control target
= control target key end

     0   :  { %s1573_s0 = inlined_call_operand.vmem [shape: s32[4], index: 0, kind: input, shape index: {}]   ;;  %s1574_s1 = inlined_call_operand.vmem [shape: bf16[512,32], index: 1, kind: input, shape index: {}]   ;;  %s1575_s2 = inlined_call_operand.vmem [shape: bf16[1,32,34], index: 2, kind: input, shape index: {}]   ;;  %s1576_s3 = inlined_call_operand.vmem [shape: f32[1,1,2], index: 3, kind: input, shape index: {}]   ;;  %s1577_s4 = inlined_call_operand.vmem [shape: f32[1,1,2], index: 4, kind: input, shape index: {}]   ;;  %s1578_s6 = inlined_call_operand.vmem [shape: f32[512,33], index: 6, kind: output, shape index: {}]   ;;  %s1579_s5 = inlined_call_operand.<no memory space> [shape: f32[1,1,1], index: 5, kind: input, shape index: {}]  }
   0x1   :  { %s11_s23 = sshll.u32 %s1573_s0, 4  ;;  %v15_v0 = vstv %s1579_s5  ;;  %s12_s23 = int_to_ptr.vmem [resolvable:$true] %s11_s23 }
   0x2   :  { %16 = vst [vmem:[#allocation4] sm:$0x1] %v15_v0  ;;  %s1233_s26 = scalar_lea.vmem %s12_s23, 16  ;;  %p1238_p1 = scmp.lt.s32.totalorder %s12_s23, %s12_s23 }
   0x3   :  { %p1234_p0 = scmp.ne.s32.totalorder %s12_s23, %s1233_s26  ;;  %p1239_p2 = scmp.lt.s32.totalorder %s1233_s26, %s1233_s26 }
   0x5   :  { %p1240_p3 = por %p1239_p2, %p1238_p1 }
   0x7   :  { %p1241_p4 = pnand %p1240_p3, %p1234_p0 }
   0x9   :  { %1244 = shalt.err (!%p1241_p4)  }
   0xa   :  { %s1255_s27 = smov [#allocation3]  }
   0xb   :  { %14 = dma.vmem_to_smem %s12_s23, 16, %s1255_s27, [#allocation2] }
   0xc   :  { %1249 = dma.done.wait [#allocation2], 16 }
   0xd   :  { %1250 = vsyncadd [#allocation2], 4294967280 }
   0xe   :  { %18 = sfence }
   0xf   :  { %s1300_s28 = smov 0  }
  0x10 LB: > { %s1306_s0 = sadd.s32 4294967295, %s1253_s28   ;;  %p1080_p5 = scmp.ge.s32.totalorder %s1253_s28, 1  ;;  %s1253_s28 = sphi %s1300_s28, %s24_s28  }
  0x11   : > { %p247_p6 = scmp.lt.s32.totalorder %s1253_s28, 5 }
  0x13   : > { %p248_p7 = pnand %p1080_p5, %p247_p6 }
  0x14   : > { %s299_s5 = sld [smem:[#allocation3 + %s1306_s0]] (!%p248_p7)  ;;  %s1081_s29 = sshll.u32 (!%p248_p7), %s1306_s0, 4 }
  0x15   : > { %251 = sbr.rel (%p248_p7) target bundleno = 733 (0x2dd), region = 40  ;;  %p294_p8 = scmp.lt.s32.totalorder (!%p248_p7), %s1081_s29, 63 }
  0x16   : > { %s306_s30 = sld [smem:[#allocation3 + %s1306_s0]] (!%p248_p7)  ;;  %s1256_s19 = smov (!%p248_p7), 32  }
  0x17   : > { %s311_s7 = sld [smem:[#allocation3 + %s1306_s0]] (!%p248_p7)  ;;  %s1257_s23 = smov (!%p248_p7), 96  }
  0x18   : > { %s316_s24 = sld [smem:[#allocation3 + %s1306_s0]] (!%p248_p7) }
  0x1a   : > { %s1581_s29 = smov (!%p294_p8, %s1081_s29), 63  ;;  %p300_p9 = scmp.lt.s32.totalorder %s299_s5, 0  ;;  %vm400_vm0 = vcmask 261120   ;;  %vm652_vm1 = vcmask 15360   ;;  %vm964_vm2 = vcmask 269312  }
  0x1b   : > { %s1082_s8 = sshll.u32 %s1581_s29, 2  ;;  %s1086_s26 = sshll.u32 %s1581_s29, 3 }
  0x1c   : > { %s1320_s11 = scalar_lea.vmem %s1574_s1, %s1082_s8  ;;  %p307_p10 = scmp.lt.s32.totalorder %s306_s30, 0 }
  0x1d   : > { %v1161_v1 = vld [vmem:[%s1320_s11] sm:$0xff]   ;;  %s1583_s5 = smov (!%p300_p9, %s299_s5), 0  ;;  %p312_p11 = scmp.lt.s32.totalorder %s311_s7, 0  ;;  %v1163_v6 = vld [vmem:[%s1320_s11 + $0x8] sm:$0xff]   ;;  %v1165_v8 = vld [vmem:[%s1320_s11 + $0x10] sm:$0xff]  }
  0x1e   : > { %v1162_v2 = vld [vmem:[%s1320_s11 + $0x20] sm:$0xff]   ;;  %1125 = vmatprep.mubr.msk.bf16.mxu0 %vm400_vm0, %v1161_v1  ;;  %s1585_s30 = smov (!%p307_p10, %s306_s30), 0  ;;  %s1110_s12 = sshll.u32 %s1583_s5, 4  ;;  %v1164_v7 = vld [vmem:[%s1320_s11 + $0x28] sm:$0xff]   ;;  %v1166_v9 = vld [vmem:[%s1320_s11 + $0x30] sm:$0xff]  }
  0x1f   : > { %1133 = vmatprep.mubr.msk.bf16.mxu1 %vm400_vm0, %v1162_v2  ;;  %s304_s15 = scalar_lea.vmem %s1575_s2, %s1110_s12  ;;  %s309_s18 = scalar_lea.vmem %s1576_s3, %s1585_s30  ;;  %v1167_v11 = vld [vmem:[%s1320_s11 + $0x18] sm:$0xff]  }
  0x20   : > { %v1159_v3 = vld [vmem:[%s304_s15 + $0x8] sm:$0xff]   ;;  %v1160_v4 = vld [vmem:[%s304_s15] sm:$0xff]   ;;  %s1587_s7 = smov (!%p312_p11, %s311_s7), 0  ;;  %v1168_v12 = vld [vmem:[%s1320_s11 + $0x38] sm:$0xff]   ;;  %p317_p12 = scmp.lt.s32.totalorder %s316_s24, 0 }
  0x21   : > { %1121 = vmatprep.subr.bf16.mxu0 %v1159_v3  ;;  %1141 = vmatprep.subr.bf16.mxu1 %v1159_v3  ;;  %v1105_v5 = vld [vmem:[%s309_s18] ss:$0 sm:$0xff]  ;;  %s314_s22 = scalar_lea.vmem %s1577_s4, %s1587_s7  ;;  %s1505_s5 = scalar_lea.vmem %s1578_s6, %s1086_s26 }
  0x22   : > { %1122 = vmatpush3.bf16.msra.mxu0 %v1159_v3  ;;  %1143 = vmatpush3.bf16.msra.mxu1 %v1159_v3  ;;  %v1106_v10 = vld [vmem:[%s314_s22] ss:$0 sm:$0xff]  ;;  %s1589_s24 = smov (!%p317_p12, %s316_s24), 0 }
  0x23   : > { %1123 = vmatprep.subr.bf16.mxu0 %v1160_v4  ;;  %1142 = vmatprep.subr.bf16.mxu1 %v1160_v4  ;;  %s319_s25 = scalar_lea.vmem [#allocation4], %s1589_s24 }
  0x24   : > { %528 = vrot.lane.b32.xlu0 %v1105_v5, %s1256_s19 }
  0x26   : > { %1124 = vmatpush3.bf16.msra.mxu0 %v1160_v4  ;;  %1144 = vmatpush3.bf16.msra.mxu1 %v1160_v4 }
  0x28   : > { %569 = vrot.lane.b32.xlu0 %v1106_v10, %s1256_s19 }
  0x29   : > { %1126 = vmatmul.mubr.msk.bf16.vlgmr.msra.gmra.mxu0 %vm400_vm0, %v1163_v6  ;;  %1134 = vmatmul.mubr.msk.bf16.vlgmr.msra.gmra.mxu1 %vm400_vm0, %v1164_v7 }
  0x2a   : > { %1129 = vmatprep.mubr.msk.bf16.mxu0 %vm400_vm0, %v1165_v8  ;;  %1137 = vmatprep.mubr.msk.bf16.mxu1 %vm400_vm0, %v1166_v9 }
  0x31   : > { %1130 = vmatmul.mubr.msk.bf16.gmra.mxu0 %vm400_vm0, %v1167_v11  ;;  %1138 = vmatmul.mubr.msk.bf16.gmra.mxu1 %vm400_vm0, %v1168_v12 }
  0x96   : > { %v1349_v13 = vpop.permute.xlu0 %528 }
  0x9a   : > { %v1365_v22 = vpop.permute.xlu0 %569 }
  0xe9   : > { %v1351_v14 = vpop.f32.mrf.mxu0  ;;  %v1353_v15 = vpop.f32.mrf.mxu1 }
  0xea   : > { %v533_v16 = vadd.f32 %v1351_v14, %v1349_v13  ;;  %v541_v17 = vadd.f32 %v1353_v15, %v1349_v13 }
  0xeb   : > { %v1359_v18 = vpop.f32.mrf.mxu0  ;;  %v1361_v19 = vpop.f32.mrf.mxu1 }
  0xec   : > { %v549_v20 = vmax.f32 %v533_v16, 0.0  ;;  %v531_v21 = vadd.f32 %v1349_v13, %v1359_v18  ;;  %v557_v27 = vmax.f32 %v541_v17, 0.0  ;;  %v539_v28 = vadd.f32 %v1349_v13, %v1361_v19 }
  0xed   : > { %v1367_v23 = vpop.f32.mrf.mxu0  ;;  %v1369_v24 = vpop.f32.mrf.mxu1 }
  0xee   : > { %v547_v25 = vmax.f32 %v531_v21, 0.0  ;;  %v534_v26 = vadd.f32 %v1367_v23, %v1349_v13  ;;  %v574_v30 = vmul.f32 %v1365_v22, %v549_v20  ;;  %v542_v33 = vadd.f32 %v1369_v24, %v1349_v13 }
  0xef   : > { %v1375_v29 = vpop.f32.mrf.mxu0  ;;  %v1378_v31 = vpop.f32.mrf.mxu1  ;;  %v555_v36 = vmax.f32 %v539_v28, 0.0  ;;  %v582_v38 = vmul.f32 %v1365_v22, %v557_v27 }
  0xf0   : > { %v550_v32 = vmax.f32 %v534_v26, 0.0  ;;  %608 = vrot.lane.b32.xlu0 %v574_v30, %s1257_s23  ;;  %v572_v35 = vmul.f32 %v1365_v22, %v547_v25  ;;  %v558_v41 = vmax.f32 %v542_v33, 0.0  ;;  %v532_v42 = vadd.f32 %v1349_v13, %v1375_v29 }
  0xf1   : > { %v1383_v34 = vpop.f32.mrf.mxu0  ;;  %v1390_v39 = vpop.f32.mrf.mxu1  ;;  %v580_v46 = vmul.f32 %v1365_v22, %v555_v36  ;;  %v540_v49 = vadd.f32 %v1349_v13, %v1378_v31 }
  0xf2   : > { %v537_v37 = vadd.f32 %v1383_v34, %v1349_v13  ;;  %604 = vrot.lane.b32.xlu1 %v572_v35, %s1257_s23  ;;  %v575_v43 = vmul.f32 %v1365_v22, %v550_v32  ;;  %v548_v48 = vmax.f32 %v532_v42, 0.0  ;;  %v583_v50 = vmul.f32 %v1365_v22, %v558_v41 }
  0xf3   : > { %v1392_v40 = vpop.f32.mrf.mxu0  ;;  %v1402_v47 = vpop.f32.mrf.mxu1  ;;  %v556_v55 = vmax.f32 %v540_v49, 0.0  ;;  %v545_v60 = vadd.f32 %v1390_v39, %v1349_v13 }
  0xf4   : > { %624 = vrot.lane.b32.xlu0 %v582_v38, %s1257_s23  ;;  %v553_v44 = vmax.f32 %v537_v37, 0.0  ;;  %v535_v45 = vadd.f32 %v1349_v13, %v1392_v40  ;;  %v543_v53 = vadd.f32 %v1349_v13, %v1402_v47  ;;  %v573_v57 = vmul.f32 %v1365_v22, %v548_v48 }
  0xf5   : > { %v1408_v51 = vpop.f32.mrf.mxu0  ;;  %v1418_v58 = vpop.f32.mrf.mxu1  ;;  %v581_v1 = vmul.f32 %v1365_v22, %v556_v55  ;;  %v561_v3 = vmax.f32 %v545_v60, 0.0 }
  0xf6   : > { %610 = vrot.lane.b32.xlu1 %v575_v43, %s1257_s23  ;;  %v551_v52 = vmax.f32 %v535_v45, 0.0  ;;  %v578_v54 = vmul.f32 %v1365_v22, %v553_v44  ;;  %v538_v56 = vadd.f32 %v1408_v51, %v1349_v13  ;;  %v559_v61 = vmax.f32 %v543_v53, 0.0 }
  0xf7   : > { %v1420_v59 = vpop.f32.mrf.mxu0  ;;  %v1430_v2 = vpop.f32.mrf.mxu1  ;;  %v586_v8 = vmul.f32 %v1365_v22, %v561_v3  ;;  %v546_v9 = vadd.f32 %v1418_v58, %v1349_v13 }
  0xf8   : > { %620 = vrot.lane.b32.xlu0 %v580_v46, %s1257_s23  ;;  %v576_v62 = vmul.f32 %v1365_v22, %v551_v52  ;;  %v554_v63 = vmax.f32 %v538_v56, 0.0  ;;  %v536_v0 = vadd.f32 %v1349_v13, %v1420_v59  ;;  %v584_v4 = vmul.f32 %v1365_v22, %v559_v61 }
  0xf9   : > { %v544_v6 = vadd.f32 %v1349_v13, %v1430_v2  ;;  %v562_v12 = vmax.f32 %v546_v9, 0.0 }
  0xfa   : > { %626 = vrot.lane.b32.xlu1 %v583_v50, %s1257_s23  ;;  %v552_v5 = vmax.f32 %v536_v0, 0.0  ;;  %v579_v7 = vmul.f32 %v1365_v22, %v554_v63  ;;  %v1466_v63 = vld [vmem:[%s319_s25] ss:$0 sm:$0xff] }
  0xfb   : > { %v560_v11 = vmax.f32 %v544_v6, 0.0  ;;  %v587_v17 = vmul.f32 %v1365_v22, %v562_v12 }
  0xfc   : > { %616 = vrot.lane.b32.xlu0 %v578_v54, %s1257_s23  ;;  %v577_v10 = vmul.f32 %v1365_v22, %v552_v5 }
  0xfd   : > { %v585_v16 = vmul.f32 %v1365_v22, %v560_v11 }
  0xfe   : > { %606 = vrot.lane.b32.xlu1 %v573_v57, %s1257_s23 }
 0x100   : > { %612 = vrot.lane.b32.xlu0 %v576_v62, %s1257_s23  ;;  %v1258_v62 = vmov 0  }
 0x101   : > { %1157 = vset.pattern.permute.xlu1 %v1258_v62  ;;  %1158 = vset.pattern.permute.xlu0 %v1258_v62 }
 0x102   : > { %622 = vrot.lane.b32.xlu1 %v581_v1, %s1257_s23 }
 0x104   : > { %628 = vrot.lane.b32.xlu0 %v584_v4, %s1257_s23 }
 0x106   : > { %618 = vrot.lane.b32.xlu1 %v579_v7, %s1257_s23 }
 0x108   : > { %632 = vrot.lane.b32.xlu0 %v586_v8, %s1257_s23 }
 0x10a   : > { %614 = vrot.lane.b32.xlu1 %v577_v10, %s1257_s23 }
 0x10e   : > { %630 = vrot.lane.b32.xlu1 %v585_v16, %s1257_s23 }
 0x112   : > { %634 = vrot.lane.b32.xlu1 %v587_v17, %s1257_s23 }
 0x162   : > { %v609_v20 = vpop.permute.xlu0 %608 }
 0x163   : > { %v659_v13 = vsel %vm652_vm1, %v609_v20, 0.0 }
 0x164   : > { %v605_v21 = vpop.permute.xlu1 %604  ;;  %660 = vadd.xlane.f32.xlu0 %v659_v13 }
 0x165   : > { %v653_v26 = vsel %vm652_vm1, %v605_v21, 0.0 }
 0x166   : > { %v625_v25 = vpop.permute.xlu0 %624 }
 0x167   : > { %v683_v27 = vsel %vm652_vm1, %v625_v25, 0.0 }
 0x168   : > { %v611_v28 = vpop.permute.xlu1 %610  ;;  %654 = vadd.xlane.f32.xlu0 %v653_v26  ;;  %684 = vadd.xlane.f32.xlu1 %v683_v27 }
 0x169   : > { %v662_v32 = vsel %vm652_vm1, %v611_v28, 0.0 }
 0x16a   : > { %v621_v30 = vpop.permute.xlu0 %620 }
 0x16b   : > { %v677_v22 = vsel %vm652_vm1, %v621_v30, 0.0 }
 0x16c   : > { %v627_v33 = vpop.permute.xlu1 %626  ;;  %663 = vadd.xlane.f32.xlu0 %v662_v32  ;;  %678 = vadd.xlane.f32.xlu1 %v677_v22 }
 0x16d   : > { %v686_v36 = vsel %vm652_vm1, %v627_v33, 0.0 }
 0x16e   : > { %v617_v35 = vpop.permute.xlu0 %616 }
 0x16f   : > { %v671_v44 = vsel %vm652_vm1, %v617_v35, 0.0 }
 0x170   : > { %v607_v37 = vpop.permute.xlu1 %606  ;;  %687 = vadd.xlane.f32.xlu0 %v686_v36 }
 0x171   : > { %v656_v38 = vsel %vm652_vm1, %v607_v37, 0.0 }
 0x172   : > { %v613_v41 = vpop.permute.xlu0 %612  ;;  %657 = vadd.xlane.f32.xlu1 %v656_v38 }
 0x173   : > { %v665_v49 = vsel %vm652_vm1, %v613_v41, 0.0 }
 0x174   : > { %v623_v42 = vpop.permute.xlu1 %622 }
 0x175   : > { %v680_v43 = vsel %vm652_vm1, %v623_v42, 0.0 }
 0x176   : > { %681 = vadd.xlane.f32.xlu0 %v680_v43  ;;  %672 = vadd.xlane.f32.xlu1 %v671_v44  ;;  %v629_v45 = vpop.permute.xlu0 %628 }
 0x177   : > { %v689_v52 = vsel %vm652_vm1, %v629_v45, 0.0 }
 0x178   : > { %v619_v46 = vpop.permute.xlu1 %618 }
 0x179   : > { %v674_v48 = vsel %vm652_vm1, %v619_v46, 0.0 }
 0x17a   : > { %675 = vadd.xlane.f32.xlu0 %v674_v48  ;;  %666 = vadd.xlane.f32.xlu1 %v665_v49  ;;  %v633_v54 = vpop.permute.xlu0 %632 }
 0x17b   : > { %v695_v56 = vsel %vm652_vm1, %v633_v54, 0.0 }
 0x17c   : > { %v615_v50 = vpop.permute.xlu1 %614 }
 0x17d   : > { %v668_v53 = vsel %vm652_vm1, %v615_v50, 0.0 }
 0x17e   : > { %690 = vadd.xlane.f32.xlu1 %v689_v52  ;;  %669 = vadd.xlane.f32.xlu0 %v668_v53 }
 0x180   : > { %v631_v55 = vpop.permute.xlu1 %630 }
 0x181   : > { %v692_v57 = vsel %vm652_vm1, %v631_v55, 0.0 }
 0x182   : > { %696 = vadd.xlane.f32.xlu1 %v695_v56  ;;  %693 = vadd.xlane.f32.xlu0 %v692_v57 }
 0x184   : > { %v635_v60 = vpop.permute.xlu1 %634 }
 0x185   : > { %v698_v61 = vsel %vm652_vm1, %v635_v60, 0.0 }
 0x186   : > { %699 = vadd.xlane.f32.xlu0 %v698_v61 }
 0x1ed   : > { %v661_v0 = vpop.xlane.xlu0 %660 }
 0x1ee   : > { %v710_v1 = vadd.f32 %v1466_v63, %v661_v0 }
 0x1f0   : > { %v726_v3 = vsub.f32 0.0, %v710_v1 }
 0x1f1   : > { %v655_v4 = vpop.xlane.xlu0 %654  ;;  %v685_v5 = vpop.xlane.xlu1 %684 }
 0x1f2   : > { %v744_v6 = vmul.f32 1.442695, %v726_v3  ;;  %v708_v7 = vadd.f32 %v1466_v63, %v655_v4  ;;  %v718_v8 = vadd.f32 %v1466_v63, %v685_v5 }
 0x1f4   : > { %1169 = vpow2.f32 %v744_v6  ;;  %v724_v9 = vsub.f32 0.0, %v708_v7  ;;  %v734_v10 = vsub.f32 0.0, %v718_v8 }
 0x1f5   : > { %v664_v11 = vpop.xlane.xlu0 %663  ;;  %v679_v12 = vpop.xlane.xlu1 %678 }
 0x1f6   : > { %v740_v16 = vmul.f32 1.442695, %v724_v9  ;;  %v760_v17 = vmul.f32 1.442695, %v734_v10  ;;  %v711_v20 = vadd.f32 %v1466_v63, %v664_v11  ;;  %v716_v13 = vadd.f32 %v1466_v63, %v679_v12 }
 0x1f8   : > { %1171 = vpow2.f32 %v740_v16  ;;  %v727_v21 = vsub.f32 0.0, %v711_v20  ;;  %v732_v25 = vsub.f32 0.0, %v716_v13 }
 0x1f9   : > { %1173 = vpow2.f32 %v760_v17  ;;  %v688_v26 = vpop.xlane.xlu0 %687 }
 0x1fa   : > { %v746_v27 = vmul.f32 1.442695, %v727_v21  ;;  %v756_v28 = vmul.f32 1.442695, %v732_v25  ;;  %v719_v30 = vadd.f32 %v1466_v63, %v688_v26 }
 0x1fb   : > { %v658_v32 = vpop.xlane.xlu1 %657 }
 0x1fc   : > { %1175 = vpow2.f32 %v746_v27  ;;  %v735_v22 = vsub.f32 0.0, %v719_v30  ;;  %v709_v33 = vadd.f32 %v1466_v63, %v658_v32 }
 0x1fd   : > { %1177 = vpow2.f32 %v756_v28 }
 0x1fe   : > { %v762_v35 = vmul.f32 1.442695, %v735_v22  ;;  %v725_v36 = vsub.f32 0.0, %v709_v33 }
 0x1ff   : > { %v682_v37 = vpop.xlane.xlu0 %681  ;;  %v673_v38 = vpop.xlane.xlu1 %672 }
 0x200   : > { %v717_v41 = vadd.f32 %v1466_v63, %v682_v37  ;;  %1179 = vpow2.f32 %v762_v35  ;;  %v742_v44 = vmul.f32 1.442695, %v725_v36  ;;  %v714_v54 = vadd.f32 %v1466_v63, %v673_v38 }
 0x201   : > { %v1170_v42 = vpop.eup %1169 }
 0x202   : > { %v774_v43 = vadd.f32 1.0, %v1170_v42  ;;  %v733_v46 = vsub.f32 0.0, %v717_v41  ;;  %v730_v0 = vsub.f32 0.0, %v714_v54 }
 0x203   : > { %v667_v45 = vpop.xlane.xlu1 %666  ;;  %v676_v48 = vpop.xlane.xlu0 %675 }
 0x204   : > { %1181 = vrcp.f32 %v774_v43  ;;  %v758_v56 = vmul.f32 1.442695, %v733_v46  ;;  %v752_v7 = vmul.f32 1.442695, %v730_v0  ;;  %v712_v9 = vadd.f32 %v1466_v63, %v667_v45 }
 0x205   : > { %v1172_v49 = vpop.eup %1171  ;;  %1183 = vpow2.f32 %v742_v44  ;;  %v715_v13 = vadd.f32 %v1466_v63, %v676_v48 }
 0x206   : > { %v1174_v50 = vpop.eup %1173  ;;  %v772_v52 = vadd.f32 1.0, %v1172_v49  ;;  %v728_v21 = vsub.f32 0.0, %v712_v9 }
 0x207   : > { %v782_v53 = vadd.f32 1.0, %v1174_v50  ;;  %v691_v55 = vpop.xlane.xlu1 %690  ;;  %v670_v61 = vpop.xlane.xlu0 %669  ;;  %v731_v30 = vsub.f32 0.0, %v715_v13 }
 0x208   : > { %1185 = vrcp.f32 %v772_v52  ;;  %v720_v3 = vadd.f32 %v1466_v63, %v691_v55  ;;  %v748_v32 = vmul.f32 1.442695, %v728_v21  ;;  %v713_v45 = vadd.f32 %v1466_v63, %v670_v61 }
 0x209   : > { %v1176_v57 = vpop.eup %1175  ;;  %1187 = vrcp.f32 %v782_v53  ;;  %v754_v37 = vmul.f32 1.442695, %v731_v30 }
 0x20a   : > { %v1178_v60 = vpop.eup %1177  ;;  %1189 = vpow2.f32 %v758_v56  ;;  %v775_v4 = vadd.f32 1.0, %v1176_v57  ;;  %v736_v10 = vsub.f32 0.0, %v720_v3  ;;  %v729_v53 = vsub.f32 0.0, %v713_v45 }
 0x20b   : > { %v780_v62 = vadd.f32 1.0, %v1178_v60  ;;  %v697_v1 = vpop.xlane.xlu1 %696  ;;  %v694_v11 = vpop.xlane.xlu0 %693 }
 0x20c   : > { %v722_v5 = vadd.f32 %v1466_v63, %v697_v1  ;;  %v764_v25 = vmul.f32 1.442695, %v736_v10  ;;  %v721_v54 = vadd.f32 %v1466_v63, %v694_v11  ;;  %v750_v57 = vmul.f32 1.442695, %v729_v53 }
 0x20d   : > { %1191 = vrcp.f32 %v780_v62  ;;  %v1180_v6 = vpop.eup %1179 }
 0x20e   : > { %v738_v8 = vsub.f32 0.0, %v722_v5  ;;  %1193 = vrcp.f32 %v775_v4  ;;  %v783_v16 = vadd.f32 1.0, %v1180_v6  ;;  %v737_v60 = vsub.f32 0.0, %v721_v54 }
 0x20f   : > { %1195 = vpow2.f32 %v752_v7  ;;  %v700_v28 = vpop.xlane.xlu0 %699 }
 0x210   : > { %v768_v17 = vmul.f32 1.442695, %v738_v8  ;;  %v723_v35 = vadd.f32 %v1466_v63, %v700_v28  ;;  %v766_v1 = vmul.f32 1.442695, %v737_v60 }
 0x211   : > { %v1182_v12 = vpop.eup %1181 }
 0x212   : > { %816 = vperm.xlu1 %1157, %v1182_v12   ;;  %v1184_v20 = vpop.eup %1183  ;;  %1197 = vpow2.f32 %v768_v17  ;;  %v739_v41 = vsub.f32 0.0, %v723_v35 }
 0x213   : > { %1199 = vrcp.f32 %v783_v16  ;;  %v773_v33 = vadd.f32 1.0, %v1184_v20 }
 0x214   : > { %1201 = vpow2.f32 %v764_v25  ;;  %v770_v46 = vmul.f32 1.442695, %v739_v41 }
 0x215   : > { %v1186_v26 = vpop.eup %1185  ;;  %1203 = vpow2.f32 %v748_v32 }
 0x216   : > { %v1188_v27 = vpop.eup %1187  ;;  %806 = vperm.xlu1 %1157, %v1186_v26   ;;  %1205 = vrcp.f32 %v773_v33 }
 0x217   : > { %856 = vperm.xlu0 %1158, %v1188_v27   ;;  %v1190_v22 = vpop.eup %1189  ;;  %1207 = vpow2.f32 %v754_v37 }
 0x218   : > { %v781_v38 = vadd.f32 1.0, %v1190_v22 }
 0x21a   : > { %v1192_v36 = vpop.eup %1191  ;;  %1209 = vrcp.f32 %v781_v38 }
 0x21b   : > { %904 = vrot.lane.b32.xlu0 %v1182_v12, %s1256_s19  ;;  %846 = vperm.xlu1 %1157, %v1192_v36   ;;  %v1194_v42 = vpop.eup %1193 }
 0x21c   : > { %v1196_v43 = vpop.eup %1195 }
 0x21d   : > { %v778_v50 = vadd.f32 1.0, %v1196_v43 }
 0x21f   : > { %920 = vrot.lane.b32.xlu0 %v1188_v27, %s1256_s19  ;;  %821 = vperm.xlu1 %1157, %v1194_v42   ;;  %v1198_v44 = vpop.eup %1197 }
 0x220   : > { %v1200_v48 = vpop.eup %1199  ;;  %v786_v49 = vadd.f32 1.0, %v1198_v44 }
 0x221   : > { %v1202_v52 = vpop.eup %1201 }
 0x222   : > { %1211 = vrcp.f32 %v786_v49  ;;  %v784_v55 = vadd.f32 1.0, %v1202_v52  ;;  %v1204_v56 = vpop.eup %1203 }
 0x223   : > { %900 = vrot.lane.b32.xlu0 %v1186_v26, %s1256_s19  ;;  %861 = vperm.xlu1 %1157, %v1200_v48   ;;  %1213 = vpow2.f32 %v770_v46  ;;  %v1206_v61 = vpop.eup %1205  ;;  %v776_v62 = vadd.f32 1.0, %v1204_v56 }
 0x224   : > { %1215 = vrcp.f32 %v778_v50  ;;  %v1208_v0 = vpop.eup %1207 }
 0x225   : > { %1217 = vrcp.f32 %v784_v55  ;;  %v779_v4 = vadd.f32 1.0, %v1208_v0 }
 0x226   : > { %1219 = vpow2.f32 %v750_v57 }
 0x227   : > { %916 = vrot.lane.b32.xlu0 %v1192_v36, %s1256_s19  ;;  %906 = vrot.lane.b32.xlu1 %v1194_v42, %s1256_s19  ;;  %v1210_v63 = vpop.eup %1209  ;;  %1221 = vrcp.f32 %v776_v62 }
 0x228   : > { %1223 = vpow2.f32 %v766_v1 }
 0x229   : > { %1225 = vrcp.f32 %v779_v4 }
 0x22b   : > { %922 = vrot.lane.b32.xlu1 %v1200_v48, %s1256_s19  ;;  %811 = vperm.xlu0 %1158, %v1206_v61  }
 0x22f   : > { %851 = vperm.xlu1 %1157, %v1210_v63   ;;  %v1212_v3 = vpop.eup %1211 }
 0x230   : > { %v1214_v5 = vpop.eup %1213  ;;  %876 = vperm.xlu0 %1158, %v1212_v3  }
 0x231   : > { %v1216_v6 = vpop.eup %1215  ;;  %v787_v7 = vadd.f32 1.0, %v1214_v5 }
 0x232   : > { %v1218_v8 = vpop.eup %1217 }
 0x233   : > { %902 = vrot.lane.b32.xlu1 %v1206_v61, %s1256_s19  ;;  %1227 = vrcp.f32 %v787_v7  ;;  %v1220_v9 = vpop.eup %1219 }
 0x234   : > { %912 = vrot.lane.b32.xlu0 %v1216_v6, %s1256_s19  ;;  %v1222_v10 = vpop.eup %1221  ;;  %v777_v11 = vadd.f32 1.0, %v1220_v9 }
 0x235   : > { %v1224_v12 = vpop.eup %1223 }
 0x236   : > { %1229 = vrcp.f32 %v777_v11  ;;  %v785_v16 = vadd.f32 1.0, %v1224_v12  ;;  %v1226_v17 = vpop.eup %1225 }
 0x237   : > { %918 = vrot.lane.b32.xlu1 %v1210_v63, %s1256_s19 }
 0x238   : > { %866 = vperm.xlu0 %1158, %v1218_v8   ;;  %1231 = vrcp.f32 %v785_v16 }
 0x23b   : > { %836 = vperm.xlu1 %1157, %v1216_v6  }
 0x23c   : > { %908 = vrot.lane.b32.xlu0 %v1222_v10, %s1256_s19 }
 0x23f   : > { %826 = vperm.xlu1 %1157, %v1222_v10  }
 0x240   : > { %924 = vrot.lane.b32.xlu0 %v1218_v8, %s1256_s19  ;;  %v1228_v20 = vpop.eup %1227 }
 0x243   : > { %841 = vperm.xlu1 %1157, %v1226_v17   ;;  %v1230_v13 = vpop.eup %1229 }
 0x244   : > { %928 = vrot.lane.b32.xlu0 %v1212_v3, %s1256_s19 }
 0x245   : > { %v1232_v21 = vpop.eup %1231 }
 0x247   : > { %881 = vperm.xlu1 %1157, %v1228_v20  }
 0x24b   : > { %914 = vrot.lane.b32.xlu1 %v1226_v17, %s1256_s19 }
 0x24f   : > { %831 = vperm.xlu1 %1157, %v1230_v13  }
 0x253   : > { %871 = vperm.xlu1 %1157, %v1232_v21  }
 0x257   : > { %910 = vrot.lane.b32.xlu1 %v1230_v13, %s1256_s19 }
 0x25b   : > { %926 = vrot.lane.b32.xlu1 %v1232_v21, %s1256_s19 }
 0x25f   : > { %930 = vrot.lane.b32.xlu1 %v1228_v20, %s1256_s19 }
 0x28d   : > { %v817_v25 = vpop.permute.xlu1 %816 }
 0x28e   : > { %v886_v28 = vmul.f32 %v1351_v14, %v817_v25 }
 0x291   : > { %v807_v26 = vpop.permute.xlu1 %806 }
 0x292   : > { %v857_v27 = vpop.permute.xlu0 %856  ;;  %v884_v37 = vmul.f32 %v807_v26, %v1359_v18 }
 0x293   : > { %v894_v33 = vmul.f32 %v1353_v15, %v857_v27 }
 0x296   : > { %v905_v30 = vpop.permute.xlu0 %904  ;;  %v847_v32 = vpop.permute.xlu1 %846 }
 0x297   : > { %v950_v22 = vsel %vm400_vm0, %v886_v28, %v905_v30  ;;  %v892_v43 = vmul.f32 %v847_v32, %v1361_v19 }
 0x298   : > { %967 = vst.msk [vmem:[%s1505_s5 + $0x10] sm:$0xff] %vm964_vm2, %v950_v22 }
 0x29a   : > { %v921_v35 = vpop.permute.xlu0 %920  ;;  %v822_v14 = vpop.permute.xlu1 %821 }
 0x29b   : > { %v958_v36 = vsel %vm400_vm0, %v894_v33, %v921_v35  ;;  %v887_v15 = vmul.f32 %v1367_v23, %v822_v14 }
 0x29c   : > { %975 = vst.msk [vmem:[%s1505_s5 + $0x50] sm:$0xff] %vm964_vm2, %v958_v36 }
 0x29e   : > { %v901_v38 = vpop.permute.xlu0 %900  ;;  %v862_v41 = vpop.permute.xlu1 %861 }
 0x29f   : > { %v948_v42 = vsel %vm400_vm0, %v884_v37, %v901_v38  ;;  %v895_v18 = vmul.f32 %v1369_v24, %v862_v41 }
 0x2a0   : > { %965 = vst.msk [vmem:[%s1505_s5] sm:$0xff] %vm964_vm2, %v948_v42 }
 0x2a2   : > { %v917_v44 = vpop.permute.xlu0 %916  ;;  %v907_v45 = vpop.permute.xlu1 %906 }
 0x2a3   : > { %v956_v46 = vsel %vm400_vm0, %v892_v43, %v917_v44  ;;  %v951_v48 = vsel %vm400_vm0, %v887_v15, %v907_v45 }
 0x2a4   : > { %973 = vst.msk [vmem:[%s1505_s5 + $0x40] sm:$0xff] %vm964_vm2, %v956_v46  ;;  %968 = vst.msk [vmem:[%s1505_s5 + $0x18] sm:$0xff] %vm964_vm2, %v951_v48 }
 0x2a6   : > { %v923_v49 = vpop.permute.xlu1 %922  ;;  %v812_v19 = vpop.permute.xlu0 %811 }
 0x2a7   : > { %v959_v50 = vsel %vm400_vm0, %v895_v18, %v923_v49  ;;  %v885_v52 = vmul.f32 %v812_v19, %v1375_v29 }
 0x2a8   : > { %976 = vst.msk [vmem:[%s1505_s5 + $0x58] sm:$0xff] %vm964_vm2, %v959_v50 }
 0x2aa   : > { %v852_v23 = vpop.permute.xlu1 %851 }
 0x2ab   : > { %v877_v53 = vpop.permute.xlu0 %876  ;;  %v893_v56 = vmul.f32 %v852_v23, %v1378_v31 }
 0x2ac   : > { %v898_v7 = vmul.f32 %v1390_v39, %v877_v53 }
 0x2ae   : > { %v903_v54 = vpop.permute.xlu1 %902 }
 0x2af   : > { %v949_v55 = vsel %vm400_vm0, %v885_v52, %v903_v54  ;;  %v913_v24 = vpop.permute.xlu0 %912 }
 0x2b0   : > { %966 = vst.msk [vmem:[%s1505_s5 + $0x8] sm:$0xff] %vm964_vm2, %v949_v55 }
 0x2b2   : > { %v919_v57 = vpop.permute.xlu1 %918 }
 0x2b3   : > { %v957_v60 = vsel %vm400_vm0, %v893_v56, %v919_v57  ;;  %v867_v61 = vpop.permute.xlu0 %866 }
 0x2b4   : > { %974 = vst.msk [vmem:[%s1505_s5 + $0x48] sm:$0xff] %vm964_vm2, %v957_v60  ;;  %v896_v3 = vmul.f32 %v867_v61, %v1402_v47 }
 0x2b6   : > { %v837_v62 = vpop.permute.xlu1 %836 }
 0x2b7   : > { %v890_v29 = vmul.f32 %v1383_v34, %v837_v62  ;;  %v909_v1 = vpop.permute.xlu0 %908 }
 0x2b9   : > { %v954_v0 = vsel %vm400_vm0, %v890_v29, %v913_v24 }
 0x2ba   : > { %971 = vst.msk [vmem:[%s1505_s5 + $0x30] sm:$0xff] %vm964_vm2, %v954_v0  ;;  %v827_v63 = vpop.permute.xlu1 %826 }
 0x2bb   : > { %v888_v31 = vmul.f32 %v827_v63, %v1392_v40  ;;  %v925_v5 = vpop.permute.xlu0 %924 }
 0x2bc   : > { %v960_v6 = vsel %vm400_vm0, %v896_v3, %v925_v5 }
 0x2bd   : > { %v952_v4 = vsel %vm400_vm0, %v888_v31, %v909_v1  ;;  %977 = vst.msk [vmem:[%s1505_s5 + $0x60] sm:$0xff] %vm964_vm2, %v960_v6 }
 0x2be   : > { %969 = vst.msk [vmem:[%s1505_s5 + $0x20] sm:$0xff] %vm964_vm2, %v952_v4  ;;  %v842_v34 = vpop.permute.xlu1 %841 }
 0x2bf   : > { %v929_v8 = vpop.permute.xlu0 %928  ;;  %v891_v47 = vmul.f32 %v1408_v51, %v842_v34 }
 0x2c0   : > { %v962_v9 = vsel %vm400_vm0, %v898_v7, %v929_v8 }
 0x2c1   : > { %979 = vst.msk [vmem:[%s1505_s5 + $0x70] sm:$0xff] %vm964_vm2, %v962_v9 }
 0x2c2   : > { %v882_v40 = vpop.permute.xlu1 %881 }
 0x2c3   : > { %v899_v25 = vmul.f32 %v1418_v58, %v882_v40 }
 0x2c6   : > { %v915_v10 = vpop.permute.xlu1 %914 }
 0x2c7   : > { %v955_v11 = vsel %vm400_vm0, %v891_v47, %v915_v10 }
 0x2c8   : > { %972 = vst.msk [vmem:[%s1505_s5 + $0x38] sm:$0xff] %vm964_vm2, %v955_v11 }
 0x2ca   : > { %v832_v12 = vpop.permute.xlu1 %831 }
 0x2cb   : > { %v889_v17 = vmul.f32 %v832_v12, %v1420_v59 }
 0x2ce   : > { %v872_v16 = vpop.permute.xlu1 %871 }
 0x2cf   : > { %v897_v13 = vmul.f32 %v872_v16, %v1430_v2 }
 0x2d2   : > { %v911_v39 = vpop.permute.xlu1 %910 }
 0x2d3   : > { %v953_v20 = vsel %vm400_vm0, %v889_v17, %v911_v39 }
 0x2d4   : > { %970 = vst.msk [vmem:[%s1505_s5 + $0x28] sm:$0xff] %vm964_vm2, %v953_v20 }
 0x2d6   : > { %v927_v21 = vpop.permute.xlu1 %926 }
 0x2d7   : > { %v961_v51 = vsel %vm400_vm0, %v897_v13, %v927_v21 }
 0x2d8   : > { %978 = vst.msk [vmem:[%s1505_s5 + $0x68] sm:$0xff] %vm964_vm2, %v961_v51 }
 0x2da   : > { %v931_v26 = vpop.permute.xlu1 %930 }
 0x2db   : > { %v963_v27 = vsel %vm400_vm0, %v899_v25, %v931_v26 }
 0x2dc   : > { %980 = vst.msk [vmem:[%s1505_s5 + $0x78] sm:$0xff] %vm964_vm2, %v963_v27 }
 0x2dd PF: > { %s24_s28 = sadd.s32 1, %s1253_s28  }
 0x2de   : > { %p21_p13 = scmp.ge.s32.totalorder %s24_s28, 6  }
 0x2e0   :  { %23 = sbr.rel (!%p21_p13) target bundleno = 16 (0x10), region = 82 }

// kernel: _forward.5
= control target key start
LH: loop header
LB: loop body
LE: loop exit
PB: predicated region body
PF: predicated region fallthrough
CT: control target
= control target key end

     0   :  { %s1460_s18 = smov 0   ;;  %s1886_s0 = inlined_call_operand.vmem [shape: f32[256,64], index: 0, kind: input, shape index: {}]   ;;  %s1887_s1 = inlined_call_operand.vmem [shape: f32[256,16], index: 1, kind: input, shape index: {}]   ;;  %s1888_s2 = inlined_call_operand.vmem [shape: f32[2,64,33], index: 2, kind: input, shape index: {}]   ;;  %s1889_s3 = inlined_call_operand.vmem [shape: f32[2,16,33], index: 3, kind: input, shape index: {}]   ;;  %s1890_s4 = inlined_call_operand.vmem [shape: f32[2,256,33], index: 4, kind: output, shape index: {0}]   ;;  %s1891_s5 = inlined_call_operand.vmem [shape: f32[2,256,33], index: 5, kind: output, shape index: {1}]  }
   0x1 LB: > { %s1141_s19 = sadd.s32 4294967295, %s1428_s18   ;;  %p1145_p0 = scmp.ge.s32.totalorder %s1428_s18, 1  ;;  %s1428_s18 = sphi %s1460_s18, %s16_s18  }
   0x2   : > { %p200_p1 = scmp.lt.s32.totalorder %s1428_s18, 3 }
   0x4   : > { %p201_p2 = pnand %p1145_p0, %p200_p1 }
   0x5   : > { %p238_p3 = scmp.lt.s32.totalorder (!%p201_p2), %s1141_s19, 1 }
   0x6   : > { %204 = sbr.rel (%p201_p2) target bundleno = 287 (0x11f), region = 36 }
   0xb   : > { %v653_v0 = vld [vmem:[%s1887_s1] sm:$0xff]  ;;  %vm687_vm0 = vcmask 130048   ;;  %vm298_vm1 = vcmask 523264   ;;  %s1893_s19 = smov (!%p238_p3, %s1141_s19), 1  ;;  %v654_v8 = vld [vmem:[%s1887_s1 + $0x8] sm:$0xff]  ;;  %v655_v9 = vld [vmem:[%s1887_s1 + $0x10] sm:$0xff] }
   0xc   : > { %v258_v1 = vld [vmem:[%s1886_s0] sm:$0xff]  ;;  %1366 = vmatprep.mubr.msk.f32.mxu1 %vm687_vm0, %v653_v0  ;;  %s1220_s24 = sshll.u32 %s1893_s19, 6  ;;  %s1221_s28 = sshll.u32 %s1893_s19, 4  ;;  %v656_v12 = vld [vmem:[%s1887_s1 + $0x18] sm:$0xff]  ;;  %v658_v16 = vld [vmem:[%s1887_s1 + $0x28] sm:$0xff]  ;;  %vm620_vm2 = vcmask 269312  }
   0xd   : > { %1314 = vmatprep.mubr.msk.f32.mxu0 %vm298_vm1, %v258_v1  ;;  %s1482_s27 = scalar_lea.vmem %s1888_s2, %s1220_s24  ;;  %s247_s6 = scalar_lea.vmem %s1889_s3, %s1221_s28  ;;  %v657_v13 = vld [vmem:[%s1887_s1 + $0x20] sm:$0xff]  ;;  %v659_v17 = vld [vmem:[%s1887_s1 + $0x30] sm:$0xff]  ;;  %v259_v18 = vld [vmem:[%s1886_s0 + $0x8] sm:$0xff] }
   0xe   : > { %v297_v2 = vld [vmem:[%s1482_s27 + $0x38] sm:$0xff]  ;;  %v296_v3 = vld [vmem:[%s1482_s27 + $0x30] sm:$0xff]  ;;  %v295_v4 = vld [vmem:[%s1482_s27 + $0x28] sm:$0xff]  ;;  %s1222_s16 = sshll.u32 %s1893_s19, 8 }
   0xf   : > { %1298 = vmatprep.subr.mxu0 %v297_v2  ;;  %v686_v5 = vld [vmem:[%s247_s6 + $0x8] sm:$0xff]  ;;  %v685_v6 = vld [vmem:[%s247_s6] sm:$0xff]  ;;  %v293_v10 = vld [vmem:[%s1482_s27 + $0x18] sm:$0xff]  ;;  %s1748_s21 = scalar_lea.vmem %s1891_s5, %s1222_s16  ;;  %s1761_s23 = scalar_lea.vmem %s1890_s4, %s1222_s16 }
  0x10   : > { %1299 = vmatpush3.msra.mxu0 %v297_v2  ;;  %1362 = vmatprep.subr.mxu1 %v686_v5  ;;  %v294_v7 = vld [vmem:[%s1482_s27 + $0x20] sm:$0xff]  ;;  %v292_v11 = vld [vmem:[%s1482_s27 + $0x10] sm:$0xff]  ;;  %v291_v14 = vld [vmem:[%s1482_s27 + $0x8] sm:$0xff] }
  0x11   : > { %1300 = vmatprep.subr.mxu0 %v296_v3  ;;  %1363 = vmatpush3.msra.mxu1 %v686_v5  ;;  %v290_v15 = vld [vmem:[%s1482_s27] sm:$0xff]  ;;  %v260_v19 = vld [vmem:[%s1886_s0 + $0x10] sm:$0xff]  ;;  %v660_v20 = vld [vmem:[%s1887_s1 + $0x38] sm:$0xff] }
  0x12   : > { %1301 = vmatpush3.msra.mxu0 %v296_v3  ;;  %1364 = vmatprep.subr.mxu1 %v685_v6  ;;  %v661_v21 = vld [vmem:[%s1887_s1 + $0x40] sm:$0xff]  ;;  %v261_v22 = vld [vmem:[%s1886_s0 + $0x18] sm:$0xff]  ;;  %v662_v24 = vld [vmem:[%s1887_s1 + $0x48] sm:$0xff] }
  0x13   : > { %1302 = vmatprep.subr.mxu0 %v295_v4  ;;  %1365 = vmatpush3.msra.mxu1 %v685_v6  ;;  %v262_v23 = vld [vmem:[%s1886_s0 + $0x20] sm:$0xff]  ;;  %v663_v25 = vld [vmem:[%s1887_s1 + $0x50] sm:$0xff]  ;;  %v263_v26 = vld [vmem:[%s1886_s0 + $0x28] sm:$0xff] }
  0x14   : > { %1303 = vmatpush3.msra.mxu0 %v295_v4  ;;  %1367 = vmatmul.mubr.msk.f32.vlgmr.msra.gmra.mxu1 %vm687_vm0, %v654_v8  ;;  %v264_v27 = vld [vmem:[%s1886_s0 + $0x30] sm:$0xff]  ;;  %v664_v28 = vld [vmem:[%s1887_s1 + $0x58] sm:$0xff]  ;;  %v665_v29 = vld [vmem:[%s1887_s1 + $0x60] sm:$0xff] }
  0x15   : > { %1304 = vmatprep.subr.mxu0 %v294_v7  ;;  %1369 = vmatprep.mubr.msk.f32.mxu1 %vm687_vm0, %v655_v9  ;;  %v265_v30 = vld [vmem:[%s1886_s0 + $0x38] sm:$0xff]  ;;  %v266_v31 = vld [vmem:[%s1886_s0 + $0x40] sm:$0xff]  ;;  %v666_v32 = vld [vmem:[%s1887_s1 + $0x68] sm:$0xff] }
  0x16   : > { %1305 = vmatpush3.msra.mxu0 %v294_v7  ;;  %v667_v33 = vld [vmem:[%s1887_s1 + $0x70] sm:$0xff]  ;;  %v267_v34 = vld [vmem:[%s1886_s0 + $0x48] sm:$0xff]  ;;  %v668_v36 = vld [vmem:[%s1887_s1 + $0x78] sm:$0xff] }
  0x17   : > { %1306 = vmatprep.subr.mxu0 %v293_v10  ;;  %v268_v35 = vld [vmem:[%s1886_s0 + $0x50] sm:$0xff]  ;;  %v669_v37 = vld [vmem:[%s1887_s1 + $0x80] sm:$0xff]  ;;  %v269_v38 = vld [vmem:[%s1886_s0 + $0x58] sm:$0xff] }
  0x18   : > { %1307 = vmatpush3.msra.mxu0 %v293_v10  ;;  %1370 = vmatmul.mubr.msk.f32.gmra.mxu1 %vm687_vm0, %v656_v12  ;;  %v270_v39 = vld [vmem:[%s1886_s0 + $0x60] sm:$0xff]  ;;  %v670_v40 = vld [vmem:[%s1887_s1 + $0x88] sm:$0xff]  ;;  %v671_v41 = vld [vmem:[%s1887_s1 + $0x90] sm:$0xff] }
  0x19   : > { %1308 = vmatprep.subr.mxu0 %v292_v11  ;;  %1372 = vmatprep.mubr.msk.f32.mxu1 %vm687_vm0, %v657_v13  ;;  %v271_v42 = vld [vmem:[%s1886_s0 + $0x68] sm:$0xff]  ;;  %v272_v43 = vld [vmem:[%s1886_s0 + $0x70] sm:$0xff]  ;;  %v672_v44 = vld [vmem:[%s1887_s1 + $0x98] sm:$0xff] }
  0x1a   : > { %1309 = vmatpush3.msra.mxu0 %v292_v11  ;;  %v673_v45 = vld [vmem:[%s1887_s1 + $0xa0] sm:$0xff]  ;;  %v273_v46 = vld [vmem:[%s1886_s0 + $0x78] sm:$0xff]  ;;  %v674_v48 = vld [vmem:[%s1887_s1 + $0xa8] sm:$0xff] }
  0x1b   : > { %1310 = vmatprep.subr.mxu0 %v291_v14  ;;  %v274_v47 = vld [vmem:[%s1886_s0 + $0x80] sm:$0xff]  ;;  %v675_v49 = vld [vmem:[%s1887_s1 + $0xb0] sm:$0xff]  ;;  %v275_v50 = vld [vmem:[%s1886_s0 + $0x88] sm:$0xff] }
  0x1c   : > { %1311 = vmatpush3.msra.mxu0 %v291_v14  ;;  %1373 = vmatmul.mubr.msk.f32.gmra.mxu1 %vm687_vm0, %v658_v16  ;;  %v276_v51 = vld [vmem:[%s1886_s0 + $0x90] sm:$0xff]  ;;  %v676_v52 = vld [vmem:[%s1887_s1 + $0xb8] sm:$0xff]  ;;  %v677_v53 = vld [vmem:[%s1887_s1 + $0xc0] sm:$0xff] }
  0x1d   : > { %1312 = vmatprep.subr.mxu0 %v290_v15  ;;  %1375 = vmatprep.mubr.msk.f32.mxu1 %vm687_vm0, %v659_v17  ;;  %v277_v54 = vld [vmem:[%s1886_s0 + $0x98] sm:$0xff]  ;;  %v278_v55 = vld [vmem:[%s1886_s0 + $0xa0] sm:$0xff]  ;;  %v678_v56 = vld [vmem:[%s1887_s1 + $0xc8] sm:$0xff] }
  0x1e   : > { %1313 = vmatpush3.msra.mxu0 %v290_v15  ;;  %v679_v57 = vld [vmem:[%s1887_s1 + $0xd0] sm:$0xff]  ;;  %v279_v58 = vld [vmem:[%s1886_s0 + $0xa8] sm:$0xff]  ;;  %v680_v60 = vld [vmem:[%s1887_s1 + $0xd8] sm:$0xff] }
  0x1f   : > { %1315 = vmatmul.mubr.msk.f32.vlgmr.msra.gmra.mxu0 %vm298_vm1, %v259_v18  ;;  %v280_v59 = vld [vmem:[%s1886_s0 + $0xb0] sm:$0xff]  ;;  %v681_v61 = vld [vmem:[%s1887_s1 + $0xe0] sm:$0xff]  ;;  %v281_v62 = vld [vmem:[%s1886_s0 + $0xb8] sm:$0xff] }
  0x20   : > { %1317 = vmatprep.mubr.msk.f32.mxu0 %vm298_vm1, %v260_v19  ;;  %1376 = vmatmul.mubr.msk.f32.gmra.mxu1 %vm687_vm0, %v660_v20  ;;  %v282_v63 = vld [vmem:[%s1886_s0 + $0xc0] sm:$0xff]  ;;  %v682_v0 = vld [vmem:[%s1887_s1 + $0xe8] sm:$0xff]  ;;  %v683_v1 = vld [vmem:[%s1887_s1 + $0xf0] sm:$0xff] }
  0x21   : > { %1378 = vmatprep.mubr.msk.f32.mxu1 %vm687_vm0, %v661_v21  ;;  %v283_v2 = vld [vmem:[%s1886_s0 + $0xc8] sm:$0xff]  ;;  %v284_v3 = vld [vmem:[%s1886_s0 + $0xd0] sm:$0xff]  ;;  %v684_v4 = vld [vmem:[%s1887_s1 + $0xf8] sm:$0xff] }
  0x22   : > { %v285_v5 = vld [vmem:[%s1886_s0 + $0xd8] sm:$0xff]  ;;  %v286_v6 = vld [vmem:[%s1886_s0 + $0xe0] sm:$0xff]  ;;  %v287_v7 = vld [vmem:[%s1886_s0 + $0xe8] sm:$0xff] }
  0x23   : > { %1318 = vmatmul.mubr.msk.f32.gmra.mxu0 %vm298_vm1, %v261_v22  ;;  %v288_v8 = vld [vmem:[%s1886_s0 + $0xf0] sm:$0xff]  ;;  %v289_v9 = vld [vmem:[%s1886_s0 + $0xf8] sm:$0xff] }
  0x24   : > { %1320 = vmatprep.mubr.msk.f32.mxu0 %vm298_vm1, %v262_v23  ;;  %1379 = vmatmul.mubr.msk.f32.gmra.mxu1 %vm687_vm0, %v662_v24 }
  0x25   : > { %1381 = vmatprep.mubr.msk.f32.mxu1 %vm687_vm0, %v663_v25 }
  0x27   : > { %1321 = vmatmul.mubr.msk.f32.gmra.mxu0 %vm298_vm1, %v263_v26 }
  0x28   : > { %1323 = vmatprep.mubr.msk.f32.mxu0 %vm298_vm1, %v264_v27  ;;  %1382 = vmatmul.mubr.msk.f32.gmra.mxu1 %vm687_vm0, %v664_v28 }
  0x29   : > { %1384 = vmatprep.mubr.msk.f32.mxu1 %vm687_vm0, %v665_v29 }
  0x2b   : > { %1324 = vmatmul.mubr.msk.f32.gmra.mxu0 %vm298_vm1, %v265_v30 }
  0x2c   : > { %1326 = vmatprep.mubr.msk.f32.mxu0 %vm298_vm1, %v266_v31  ;;  %1385 = vmatmul.mubr.msk.f32.gmra.mxu1 %vm687_vm0, %v666_v32 }
  0x2d   : > { %1387 = vmatprep.mubr.msk.f32.mxu1 %vm687_vm0, %v667_v33 }
  0x2f   : > { %1327 = vmatmul.mubr.msk.f32.gmra.mxu0 %vm298_vm1, %v267_v34 }
  0x30   : > { %1329 = vmatprep.mubr.msk.f32.mxu0 %vm298_vm1, %v268_v35  ;;  %1388 = vmatmul.mubr.msk.f32.gmra.mxu1 %vm687_vm0, %v668_v36 }
  0x31   : > { %1390 = vmatprep.mubr.msk.f32.mxu1 %vm687_vm0, %v669_v37 }
  0x33   : > { %1330 = vmatmul.mubr.msk.f32.gmra.mxu0 %vm298_vm1, %v269_v38 }
  0x34   : > { %1332 = vmatprep.mubr.msk.f32.mxu0 %vm298_vm1, %v270_v39  ;;  %1391 = vmatmul.mubr.msk.f32.gmra.mxu1 %vm687_vm0, %v670_v40 }
  0x35   : > { %1393 = vmatprep.mubr.msk.f32.mxu1 %vm687_vm0, %v671_v41 }
  0x37   : > { %1333 = vmatmul.mubr.msk.f32.gmra.mxu0 %vm298_vm1, %v271_v42 }
  0x38   : > { %1335 = vmatprep.mubr.msk.f32.mxu0 %vm298_vm1, %v272_v43  ;;  %1394 = vmatmul.mubr.msk.f32.gmra.mxu1 %vm687_vm0, %v672_v44 }
  0x39   : > { %1396 = vmatprep.mubr.msk.f32.mxu1 %vm687_vm0, %v673_v45 }
  0x3b   : > { %1336 = vmatmul.mubr.msk.f32.gmra.mxu0 %vm298_vm1, %v273_v46 }
  0x3c   : > { %1338 = vmatprep.mubr.msk.f32.mxu0 %vm298_vm1, %v274_v47  ;;  %1397 = vmatmul.mubr.msk.f32.gmra.mxu1 %vm687_vm0, %v674_v48 }
  0x3d   : > { %1399 = vmatprep.mubr.msk.f32.mxu1 %vm687_vm0, %v675_v49 }
  0x3f   : > { %1339 = vmatmul.mubr.msk.f32.gmra.mxu0 %vm298_vm1, %v275_v50 }
  0x40   : > { %1341 = vmatprep.mubr.msk.f32.mxu0 %vm298_vm1, %v276_v51  ;;  %1400 = vmatmul.mubr.msk.f32.gmra.mxu1 %vm687_vm0, %v676_v52 }
  0x41   : > { %1402 = vmatprep.mubr.msk.f32.mxu1 %vm687_vm0, %v677_v53 }
  0x43   : > { %1342 = vmatmul.mubr.msk.f32.gmra.mxu0 %vm298_vm1, %v277_v54 }
  0x44   : > { %1344 = vmatprep.mubr.msk.f32.mxu0 %vm298_vm1, %v278_v55  ;;  %1403 = vmatmul.mubr.msk.f32.gmra.mxu1 %vm687_vm0, %v678_v56 }
  0x45   : > { %1405 = vmatprep.mubr.msk.f32.mxu1 %vm687_vm0, %v679_v57 }
  0x47   : > { %1345 = vmatmul.mubr.msk.f32.gmra.mxu0 %vm298_vm1, %v279_v58 }
  0x48   : > { %1347 = vmatprep.mubr.msk.f32.mxu0 %vm298_vm1, %v280_v59  ;;  %1406 = vmatmul.mubr.msk.f32.gmra.mxu1 %vm687_vm0, %v680_v60 }
  0x49   : > { %1408 = vmatprep.mubr.msk.f32.mxu1 %vm687_vm0, %v681_v61 }
  0x4b   : > { %1348 = vmatmul.mubr.msk.f32.gmra.mxu0 %vm298_vm1, %v281_v62 }
  0x4c   : > { %1350 = vmatprep.mubr.msk.f32.mxu0 %vm298_vm1, %v282_v63  ;;  %1409 = vmatmul.mubr.msk.f32.gmra.mxu1 %vm687_vm0, %v682_v0 }
  0x4d   : > { %1411 = vmatprep.mubr.msk.f32.mxu1 %vm687_vm0, %v683_v1 }
  0x4f   : > { %1351 = vmatmul.mubr.msk.f32.gmra.mxu0 %vm298_vm1, %v283_v2 }
  0x50   : > { %1353 = vmatprep.mubr.msk.f32.mxu0 %vm298_vm1, %v284_v3  ;;  %1412 = vmatmul.mubr.msk.f32.gmra.mxu1 %vm687_vm0, %v684_v4 }
  0x53   : > { %1354 = vmatmul.mubr.msk.f32.gmra.mxu0 %vm298_vm1, %v285_v5 }
  0x54   : > { %1356 = vmatprep.mubr.msk.f32.mxu0 %vm298_vm1, %v286_v6 }
  0x57   : > { %1357 = vmatmul.mubr.msk.f32.gmra.mxu0 %vm298_vm1, %v287_v7 }
  0x58   : > { %1359 = vmatprep.mubr.msk.f32.mxu0 %vm298_vm1, %v288_v8 }
  0x5b   : > { %1360 = vmatmul.mubr.msk.f32.gmra.mxu0 %vm298_vm1, %v289_v9 }
  0xd4   : > { %v1368_v10 = vpop.f32.mrf.mxu1 }
  0xd5   : > { %1010 = vst.msk [vmem:[%s1748_s21 + $0x8] sm:$0xff] %vm620_vm2, %v1368_v10 }
  0xd6   : > { %v850_v11 = vpop.f32.mrf.mxu1 }
  0xd7   : > { %1009 = vst.msk [vmem:[%s1748_s21] sm:$0xff] %vm620_vm2, %v850_v11 }
  0xd8   : > { %v1371_v12 = vpop.f32.mrf.mxu1 }
  0xd9   : > { %1012 = vst.msk [vmem:[%s1748_s21 + $0x18] sm:$0xff] %vm620_vm2, %v1371_v12 }
  0xda   : > { %v860_v13 = vpop.f32.mrf.mxu1 }
  0xdb   : > { %1011 = vst.msk [vmem:[%s1748_s21 + $0x10] sm:$0xff] %vm620_vm2, %v860_v13 }
  0xdc   : > { %v1374_v14 = vpop.f32.mrf.mxu1 }
  0xdd   : > { %1014 = vst.msk [vmem:[%s1748_s21 + $0x28] sm:$0xff] %vm620_vm2, %v1374_v14 }
  0xde   : > { %v870_v16 = vpop.f32.mrf.mxu1 }
  0xdf   : > { %v1316_v15 = vpop.f32.mrf.mxu0  ;;  %1013 = vst.msk [vmem:[%s1748_s21 + $0x20] sm:$0xff] %vm620_vm2, %v870_v16 }
  0xe0   : > { %622 = vst.msk [vmem:[%s1761_s23 + $0x8] sm:$0xff] %vm620_vm2, %v1316_v15  ;;  %v1377_v18 = vpop.f32.mrf.mxu1 }
  0xe1   : > { %v461_v17 = vpop.f32.mrf.mxu0  ;;  %1016 = vst.msk [vmem:[%s1748_s21 + $0x38] sm:$0xff] %vm620_vm2, %v1377_v18 }
  0xe2   : > { %621 = vst.msk [vmem:[%s1761_s23] sm:$0xff] %vm620_vm2, %v461_v17  ;;  %v880_v20 = vpop.f32.mrf.mxu1 }
  0xe3   : > { %v1319_v19 = vpop.f32.mrf.mxu0  ;;  %1015 = vst.msk [vmem:[%s1748_s21 + $0x30] sm:$0xff] %vm620_vm2, %v880_v20 }
  0xe4   : > { %624 = vst.msk [vmem:[%s1761_s23 + $0x18] sm:$0xff] %vm620_vm2, %v1319_v19  ;;  %v1380_v22 = vpop.f32.mrf.mxu1 }
  0xe5   : > { %v471_v21 = vpop.f32.mrf.mxu0  ;;  %1018 = vst.msk [vmem:[%s1748_s21 + $0x48] sm:$0xff] %vm620_vm2, %v1380_v22 }
  0xe6   : > { %623 = vst.msk [vmem:[%s1761_s23 + $0x10] sm:$0xff] %vm620_vm2, %v471_v21  ;;  %v890_v24 = vpop.f32.mrf.mxu1 }
  0xe7   : > { %v1322_v23 = vpop.f32.mrf.mxu0  ;;  %1017 = vst.msk [vmem:[%s1748_s21 + $0x40] sm:$0xff] %vm620_vm2, %v890_v24 }
  0xe8   : > { %626 = vst.msk [vmem:[%s1761_s23 + $0x28] sm:$0xff] %vm620_vm2, %v1322_v23  ;;  %v1383_v26 = vpop.f32.mrf.mxu1 }
  0xe9   : > { %v481_v25 = vpop.f32.mrf.mxu0  ;;  %1020 = vst.msk [vmem:[%s1748_s21 + $0x58] sm:$0xff] %vm620_vm2, %v1383_v26 }
  0xea   : > { %625 = vst.msk [vmem:[%s1761_s23 + $0x20] sm:$0xff] %vm620_vm2, %v481_v25  ;;  %v900_v28 = vpop.f32.mrf.mxu1 }
  0xeb   : > { %v1325_v27 = vpop.f32.mrf.mxu0  ;;  %1019 = vst.msk [vmem:[%s1748_s21 + $0x50] sm:$0xff] %vm620_vm2, %v900_v28 }
  0xec   : > { %628 = vst.msk [vmem:[%s1761_s23 + $0x38] sm:$0xff] %vm620_vm2, %v1325_v27  ;;  %v1386_v30 = vpop.f32.mrf.mxu1 }
  0xed   : > { %v491_v29 = vpop.f32.mrf.mxu0  ;;  %1022 = vst.msk [vmem:[%s1748_s21 + $0x68] sm:$0xff] %vm620_vm2, %v1386_v30 }
  0xee   : > { %627 = vst.msk [vmem:[%s1761_s23 + $0x30] sm:$0xff] %vm620_vm2, %v491_v29  ;;  %v910_v32 = vpop.f32.mrf.mxu1 }
  0xef   : > { %v1328_v31 = vpop.f32.mrf.mxu0  ;;  %1021 = vst.msk [vmem:[%s1748_s21 + $0x60] sm:$0xff] %vm620_vm2, %v910_v32 }
  0xf0   : > { %630 = vst.msk [vmem:[%s1761_s23 + $0x48] sm:$0xff] %vm620_vm2, %v1328_v31  ;;  %v1389_v34 = vpop.f32.mrf.mxu1 }
  0xf1   : > { %v501_v33 = vpop.f32.mrf.mxu0  ;;  %1024 = vst.msk [vmem:[%s1748_s21 + $0x78] sm:$0xff] %vm620_vm2, %v1389_v34 }
  0xf2   : > { %629 = vst.msk [vmem:[%s1761_s23 + $0x40] sm:$0xff] %vm620_vm2, %v501_v33  ;;  %v920_v36 = vpop.f32.mrf.mxu1 }
  0xf3   : > { %v1331_v35 = vpop.f32.mrf.mxu0  ;;  %1023 = vst.msk [vmem:[%s1748_s21 + $0x70] sm:$0xff] %vm620_vm2, %v920_v36 }
  0xf4   : > { %632 = vst.msk [vmem:[%s1761_s23 + $0x58] sm:$0xff] %vm620_vm2, %v1331_v35  ;;  %v1392_v38 = vpop.f32.mrf.mxu1 }
  0xf5   : > { %v511_v37 = vpop.f32.mrf.mxu0  ;;  %1026 = vst.msk [vmem:[%s1748_s21 + $0x88] sm:$0xff] %vm620_vm2, %v1392_v38 }
  0xf6   : > { %631 = vst.msk [vmem:[%s1761_s23 + $0x50] sm:$0xff] %vm620_vm2, %v511_v37  ;;  %v930_v40 = vpop.f32.mrf.mxu1 }
  0xf7   : > { %v1334_v39 = vpop.f32.mrf.mxu0  ;;  %1025 = vst.msk [vmem:[%s1748_s21 + $0x80] sm:$0xff] %vm620_vm2, %v930_v40 }
  0xf8   : > { %634 = vst.msk [vmem:[%s1761_s23 + $0x68] sm:$0xff] %vm620_vm2, %v1334_v39  ;;  %v1395_v42 = vpop.f32.mrf.mxu1 }
  0xf9   : > { %v521_v41 = vpop.f32.mrf.mxu0  ;;  %1028 = vst.msk [vmem:[%s1748_s21 + $0x98] sm:$0xff] %vm620_vm2, %v1395_v42 }
  0xfa   : > { %633 = vst.msk [vmem:[%s1761_s23 + $0x60] sm:$0xff] %vm620_vm2, %v521_v41  ;;  %v940_v44 = vpop.f32.mrf.mxu1 }
  0xfb   : > { %v1337_v43 = vpop.f32.mrf.mxu0  ;;  %1027 = vst.msk [vmem:[%s1748_s21 + $0x90] sm:$0xff] %vm620_vm2, %v940_v44 }
  0xfc   : > { %636 = vst.msk [vmem:[%s1761_s23 + $0x78] sm:$0xff] %vm620_vm2, %v1337_v43  ;;  %v1398_v46 = vpop.f32.mrf.mxu1 }
  0xfd   : > { %v531_v45 = vpop.f32.mrf.mxu0  ;;  %1030 = vst.msk [vmem:[%s1748_s21 + $0xa8] sm:$0xff] %vm620_vm2, %v1398_v46 }
  0xfe   : > { %635 = vst.msk [vmem:[%s1761_s23 + $0x70] sm:$0xff] %vm620_vm2, %v531_v45  ;;  %v950_v48 = vpop.f32.mrf.mxu1 }
  0xff   : > { %v1340_v47 = vpop.f32.mrf.mxu0  ;;  %1029 = vst.msk [vmem:[%s1748_s21 + $0xa0] sm:$0xff] %vm620_vm2, %v950_v48 }
 0x100   : > { %638 = vst.msk [vmem:[%s1761_s23 + $0x88] sm:$0xff] %vm620_vm2, %v1340_v47  ;;  %v1401_v50 = vpop.f32.mrf.mxu1 }
 0x101   : > { %v541_v49 = vpop.f32.mrf.mxu0  ;;  %1032 = vst.msk [vmem:[%s1748_s21 + $0xb8] sm:$0xff] %vm620_vm2, %v1401_v50 }
 0x102   : > { %637 = vst.msk [vmem:[%s1761_s23 + $0x80] sm:$0xff] %vm620_vm2, %v541_v49  ;;  %v960_v52 = vpop.f32.mrf.mxu1 }
 0x103   : > { %v1343_v51 = vpop.f32.mrf.mxu0  ;;  %1031 = vst.msk [vmem:[%s1748_s21 + $0xb0] sm:$0xff] %vm620_vm2, %v960_v52 }
 0x104   : > { %640 = vst.msk [vmem:[%s1761_s23 + $0x98] sm:$0xff] %vm620_vm2, %v1343_v51  ;;  %v1404_v54 = vpop.f32.mrf.mxu1 }
 0x105   : > { %v551_v53 = vpop.f32.mrf.mxu0  ;;  %1034 = vst.msk [vmem:[%s1748_s21 + $0xc8] sm:$0xff] %vm620_vm2, %v1404_v54 }
 0x106   : > { %639 = vst.msk [vmem:[%s1761_s23 + $0x90] sm:$0xff] %vm620_vm2, %v551_v53  ;;  %v970_v56 = vpop.f32.mrf.mxu1 }
 0x107   : > { %v1346_v55 = vpop.f32.mrf.mxu0  ;;  %1033 = vst.msk [vmem:[%s1748_s21 + $0xc0] sm:$0xff] %vm620_vm2, %v970_v56 }
 0x108   : > { %642 = vst.msk [vmem:[%s1761_s23 + $0xa8] sm:$0xff] %vm620_vm2, %v1346_v55  ;;  %v1407_v58 = vpop.f32.mrf.mxu1 }
 0x109   : > { %v561_v57 = vpop.f32.mrf.mxu0  ;;  %1036 = vst.msk [vmem:[%s1748_s21 + $0xd8] sm:$0xff] %vm620_vm2, %v1407_v58 }
 0x10a   : > { %641 = vst.msk [vmem:[%s1761_s23 + $0xa0] sm:$0xff] %vm620_vm2, %v561_v57  ;;  %v980_v60 = vpop.f32.mrf.mxu1 }
 0x10b   : > { %v1349_v59 = vpop.f32.mrf.mxu0  ;;  %1035 = vst.msk [vmem:[%s1748_s21 + $0xd0] sm:$0xff] %vm620_vm2, %v980_v60 }
 0x10c   : > { %644 = vst.msk [vmem:[%s1761_s23 + $0xb8] sm:$0xff] %vm620_vm2, %v1349_v59  ;;  %v1410_v62 = vpop.f32.mrf.mxu1 }
 0x10d   : > { %v571_v61 = vpop.f32.mrf.mxu0  ;;  %1038 = vst.msk [vmem:[%s1748_s21 + $0xe8] sm:$0xff] %vm620_vm2, %v1410_v62 }
 0x10e   : > { %643 = vst.msk [vmem:[%s1761_s23 + $0xb0] sm:$0xff] %vm620_vm2, %v571_v61  ;;  %v990_v0 = vpop.f32.mrf.mxu1 }
 0x10f   : > { %v1352_v63 = vpop.f32.mrf.mxu0  ;;  %1037 = vst.msk [vmem:[%s1748_s21 + $0xe0] sm:$0xff] %vm620_vm2, %v990_v0 }
 0x110   : > { %646 = vst.msk [vmem:[%s1761_s23 + $0xc8] sm:$0xff] %vm620_vm2, %v1352_v63  ;;  %v1413_v2 = vpop.f32.mrf.mxu1 }
 0x111   : > { %v581_v1 = vpop.f32.mrf.mxu0  ;;  %1040 = vst.msk [vmem:[%s1748_s21 + $0xf8] sm:$0xff] %vm620_vm2, %v1413_v2 }
 0x112   : > { %645 = vst.msk [vmem:[%s1761_s23 + $0xc0] sm:$0xff] %vm620_vm2, %v581_v1  ;;  %v1000_v4 = vpop.f32.mrf.mxu1 }
 0x113   : > { %v1355_v3 = vpop.f32.mrf.mxu0  ;;  %1039 = vst.msk [vmem:[%s1748_s21 + $0xf0] sm:$0xff] %vm620_vm2, %v1000_v4 }
 0x114   : > { %648 = vst.msk [vmem:[%s1761_s23 + $0xd8] sm:$0xff] %vm620_vm2, %v1355_v3 }
 0x115   : > { %v591_v5 = vpop.f32.mrf.mxu0 }
 0x116   : > { %647 = vst.msk [vmem:[%s1761_s23 + $0xd0] sm:$0xff] %vm620_vm2, %v591_v5 }
 0x117   : > { %v1358_v6 = vpop.f32.mrf.mxu0 }
 0x118   : > { %650 = vst.msk [vmem:[%s1761_s23 + $0xe8] sm:$0xff] %vm620_vm2, %v1358_v6 }
 0x119   : > { %v601_v7 = vpop.f32.mrf.mxu0 }
 0x11a   : > { %649 = vst.msk [vmem:[%s1761_s23 + $0xe0] sm:$0xff] %vm620_vm2, %v601_v7 }
 0x11b   : > { %v1361_v8 = vpop.f32.mrf.mxu0 }
 0x11c   : > { %652 = vst.msk [vmem:[%s1761_s23 + $0xf8] sm:$0xff] %vm620_vm2, %v1361_v8 }
 0x11d   : > { %v611_v9 = vpop.f32.mrf.mxu0 }
 0x11e   : > { %651 = vst.msk [vmem:[%s1761_s23 + $0xf0] sm:$0xff] %vm620_vm2, %v611_v9 }
 0x11f PF: > { %s16_s18 = sadd.s32 1, %s1428_s18  }
 0x120   : > { %p13_p4 = scmp.ge.s32.totalorder %s16_s18, 4  }
 0x122   :  { %15 = sbr.rel (!%p13_p4) target bundleno = 1 (0x1), region = 81 }

</bundles_post_ra>
